<compile_context>
chip_gen: v7x
topology: tpu7x:2x2x1
jax: 0.10.0
libtpu: 0.0.40
codegen_flags: <defaults>
</compile_context>

<pallas_src>
import jax
import jax.numpy as jnp
from jax import lax
from jax.experimental import pallas as pl
from jax.experimental.pallas import tpu as pltpu


# -----------------------------------------------------------------------------
# Fused Pallas kernel (factory over the number of LSTM layers)
# -----------------------------------------------------------------------------
def _make_fused_kernel(num_layers, t_block):
    """Ref layout (grid = (T // t_block,), reduction axis marked "arbitrary"):

      refs[0]               idx    (Bp, 1)  int32     last-relevant timestep per row
      refs[1]               zx     (Tt, Bp, 4H)       layer-0 input gates (streamed block)
      refs[2]               whh0   (H, 4H)            layer-0 W_hh^T (lane-dense, gates fused)
      refs[3 + 3*(l-1) + 0] wih_l  (H, 4H)            layer-l W_ih^T   (l >= 1)
      refs[3 + 3*(l-1) + 1] whh_l  (H, 4H)            layer-l W_hh^T
      refs[3 + 3*(l-1) + 2] b_l    (1, 4H)            layer-l combined bias
      refs[-4]              wfc    (H, Cp)            FC weight^T (lane-padded)
      refs[-3]              bfc    (1, Cp)            FC bias (lane-padded)
      refs[-2]              out    (Bp, Cp)           logits (lane-dense store, last step)
      refs[-1]              state  (2L+1, Bp, H) VMEM h_0..h_{L-1}, c_0..c_{L-1}, last_h
    """

    def kernel(*refs):
        idx_ref = refs[0]
        zx_ref = refs[1]
        whh_refs = [refs[2]]
        wih_refs = []
        b_refs = []
        p = 3
        for _ in range(num_layers - 1):
            wih_refs.append(refs[p + 0])
            whh_refs.append(refs[p + 1])
            b_refs.append(refs[p + 2])
            p += 3
        wfc_ref, bfc_ref = refs[p], refs[p + 1]
        out_ref, state_ref = refs[p + 2], refs[p + 3]

        Tt, B, G = zx_ref.shape           # G = 4H (lane-dense)
        H = G // 4
        tb = pl.program_id(0)
        nb = pl.num_programs(0)

        # ---- init persistent state on the first T-block
        @pl.when(tb == 0)
        def _():
            state_ref[...] = jnp.zeros_like(state_ref)

        # ---- hoisted loads (done once per T-block, not per timestep)
        idx = idx_ref[...]                                          # (Bp, 1) int32
        whh = [r[...] for r in whh_refs]                            # each (H, 4H)
        wih = [r[...] for r in wih_refs]                            # each (H, 4H)
        bias = [jnp.broadcast_to(r[...], (B, G)) for r in b_refs]   # each (Bp, 4H)

        def cell(z, c):
            # One full-vreg sigmoid + one full-vreg tanh over the fused (B, 4H)
            # pre-activation; gates extracted with static 32-lane slices.
            sg = jax.nn.sigmoid(z)
            tg = jnp.tanh(z)
            i = sg[:, 0 * H:1 * H]
            f = sg[:, 1 * H:2 * H]
            g = tg[:, 2 * H:3 * H]
            o = sg[:, 3 * H:4 * H]
            c_new = f * c + i * g
            h_new = o * jnp.tanh(c_new)
            return h_new, c_new

        def body(t, carry):
            hs, cs, last_h = carry
            new_hs, new_cs = [], []

            # ---- layer 0: input projection was hoisted; one fused recurrent matmul
            z = zx_ref[t] + jnp.dot(hs[0], whh[0],
                                    preferred_element_type=jnp.float32)
            h_new, c_new = cell(z, cs[0])
            new_hs.append(h_new)
            new_cs.append(c_new)

            # ---- deeper layers (input = previous layer's fresh hidden)
            for li in range(1, num_layers):
                z = (jnp.dot(new_hs[-1], wih[li - 1],
                             preferred_element_type=jnp.float32)
                     + jnp.dot(hs[li], whh[li],
                               preferred_element_type=jnp.float32)
                     + bias[li - 1])
                h_new, c_new = cell(z, cs[li])
                new_hs.append(h_new)
                new_cs.append(c_new)

            # ---- last-relevant select (no (T,B,H) writeback, no XLA gather)
            take = idx == (tb * t_block + t)                        # (Bp, 1) bool
            last_h = jnp.where(take, new_hs[-1], last_h)
            return tuple(new_hs), tuple(new_cs), last_h

        hs0 = tuple(state_ref[i] for i in range(num_layers))
        cs0 = tuple(state_ref[num_layers + i] for i in range(num_layers))
        last0 = state_ref[2 * num_layers]
        # Bounded unroll: Tt <= 8 so the serial recurrence stays fully visible to
        # the LLO scheduler without blowing up the instruction footprint at large T.
        hs, cs, last_h = lax.fori_loop(0, Tt, body, (hs0, cs0, last0), unroll=True)

        # ---- persist carries for the next T-block
        for i in range(num_layers):
            state_ref[i] = hs[i]
            state_ref[num_layers + i] = cs[i]
        state_ref[2 * num_layers] = last_h

        # ---- epilogue on the last T-block only: ReLU + Linear, lane-dense store
        @pl.when(tb == nb - 1)
        def _():
            # TODO(synk): nn.Dropout treated as identity (inference mode).
            relu_h = jnp.maximum(last_h, 0.0)
            out_ref[...] = (jnp.dot(relu_h, wfc_ref[...],
                                    preferred_element_type=jnp.float32)
                            + bfc_ref[...]).astype(out_ref.dtype)

    return kernel


# -----------------------------------------------------------------------------
# Forward wrapper (mirrors LSTMModel.forward)
# -----------------------------------------------------------------------------
@jax.jit
def lstm_model_forward(inputs, seq_lengths, params):
    """inputs: (B, T, num_nodes, input_dim) f32, seq_lengths: (B,) int -> (B, C) f32."""
    B, T, N, I = inputs.shape
    D = N * I
    num_layers = len(params["whh_t"])
    G = params["whh_t"][0].shape[-1]          # 4H
    H = G // 4
    C = params["fc_b"].shape[0]
    Bp = ((B + 7) // 8) * 8                   # pad batch to f32 sublane count
    Cp = ((C + 127) // 128) * 128             # lane-dense (padded) logits

    # (B,T,N,I) -> time-major (T, Bp, D)
    x = jnp.transpose(inputs.reshape(B, T, D), (1, 0, 2))
    x = jnp.pad(x, ((0, 0), (0, Bp - B), (0, 0)))

    # Hoisted layer-0 input projection: one big lane-dense matmul in plain XLA.
    # Result stays lane-dense (T, Bp, 4H): no reshape/transpose, contiguous DMA.
    zx = (x.reshape(T * Bp, D) @ params["wih0_t"] + params["b0"]).reshape(T, Bp, G)

    # last-relevant index per row; padded rows get T (never matched -> stay zero)
    idx = jnp.clip(seq_lengths.astype(jnp.int32) - 1, 0, T - 1)
    idx = jnp.pad(idx, (0, Bp - B), constant_values=T).reshape(Bp, 1)

    # lane-pad the FC head so the only HBM store is an unmasked (Bp, 128) slab
    wfc = jnp.pad(params["fc_w_t"], ((0, 0), (0, Cp - C)))           # (H, Cp)
    bfc = jnp.pad(params["fc_b"], (0, Cp - C)).reshape(1, Cp)        # (1, Cp)

    # T-block for the pipelined "arbitrary" grid axis: largest divisor of T <= 8.
    Tt = 1
    for cand in range(1, min(T, 8) + 1):
        if T % cand == 0:
            Tt = cand
    nT = T // Tt

    args = [idx, zx, params["whh_t"][0]]
    in_specs = [
        pl.BlockSpec((Bp, 1), lambda t: (0, 0)),
        pl.BlockSpec((Tt, Bp, G), lambda t: (t, 0, 0)),
        pl.BlockSpec((H, G), lambda t: (0, 0)),
    ]
    for li in range(1, num_layers):
        args += [params["wih_t"][li - 1], params["whh_t"][li], params["b_t"][li - 1]]
        in_specs += [pl.BlockSpec((H, G), lambda t: (0, 0)),
                     pl.BlockSpec((H, G), lambda t: (0, 0)),
                     pl.BlockSpec((1, G), lambda t: (0, 0))]
    args += [wfc, bfc]
    in_specs += [pl.BlockSpec((H, Cp), lambda t: (0, 0)),
                 pl.BlockSpec((1, Cp), lambda t: (0, 0))]

    logits_pad = pl.pallas_call(
        _make_fused_kernel(num_layers, Tt),
        out_shape=jax.ShapeDtypeStruct((Bp, Cp), jnp.float32),
        grid_spec=pltpu.PrefetchScalarGridSpec(
            num_scalar_prefetch=0,
            grid=(nT,),
            in_specs=in_specs,
            out_specs=pl.BlockSpec((Bp, Cp), lambda t: (0, 0)),
            scratch_shapes=[pltpu.VMEM((2 * num_layers + 1, Bp, H), jnp.float32)]),
        compiler_params=pltpu.CompilerParams(
            dimension_semantics=("arbitrary",),        # serial recurrence over T
            vmem_limit_bytes=32 * 1024 * 1024),        # safe on v5e/v6e/v7x
    )(*args)
    return logits_pad[:B, :C]


# -----------------------------------------------------------------------------
# Parameters: raw (PyTorch layout, used by the reference) + kernel layouts
# -----------------------------------------------------------------------------
def make_params(key, input_size, hidden, num_layers, num_classes):
    raw = {"lstm": []}
    scale = 0.1
    for layer in range(num_layers):
        d_in = input_size if layer == 0 else hidden
        key, k1, k2, k3, k4 = jax.random.split(key, 5)
        w_ih = jax.random.normal(k1, (4 * hidden, d_in), jnp.float32) * scale
        w_hh = jax.random.normal(k2, (4 * hidden, hidden), jnp.float32) * scale
        b_ih = jax.random.normal(k3, (4 * hidden,), jnp.float32) * scale
        b_hh = jax.random.normal(k4, (4 * hidden,), jnp.float32) * scale
        raw["lstm"].append((w_ih, w_hh, b_ih, b_hh))
    key, k5, k6 = jax.random.split(key, 3)
    raw["fc_w"] = jax.random.normal(k5, (num_classes, hidden), jnp.float32) * scale
    raw["fc_b"] = jax.random.normal(k6, (num_classes,), jnp.float32) * scale
    return raw


def prepare_params(raw):
    """Convert PyTorch-layout params into the kernel's lane-dense, gate-fused layouts."""
    lstm = raw["lstm"]
    H = lstm[0][1].shape[1]
    w_ih0, w_hh0, b_ih0, b_hh0 = lstm[0]
    p = {
        "wih0_t": w_ih0.T,                             # (D, 4H), hoisted projection
        "b0": (b_ih0 + b_hh0).reshape(1, 4 * H),       # (1, 4H)
        "whh_t": [], "wih_t": [], "b_t": [],
        "fc_w_t": raw["fc_w"].T,                       # (H, C)
        "fc_b": raw["fc_b"],                           # (C,)
    }
    for li, (w_ih, w_hh, b_ih, b_hh) in enumerate(lstm):
        p["whh_t"].append(w_hh.T)                      # (H, 4H) lane-dense, gates fused
        if li > 0:
            p["wih_t"].append(w_ih.T)                  # (H, 4H)
            p["b_t"].append((b_ih + b_hh).reshape(1, 4 * H))
    return p


# -----------------------------------------------------------------------------
# Pure-JAX reference (mirrors nn.LSTM + last_relevant + ReLU + Linear)
# -----------------------------------------------------------------------------
def _reference_forward(inputs, seq_lengths, raw):
    B, T, N, I = inputs.shape
    seq = jnp.transpose(inputs.reshape(B, T, N * I), (1, 0, 2))      # (T, B, D)
    for (w_ih, w_hh, b_ih, b_hh) in raw["lstm"]:
        H = w_hh.shape[1]

        def step(carry, x_t, w_ih=w_ih, w_hh=w_hh, b_ih=b_ih, b_hh=b_hh, H=H):
            h, c = carry
            z = x_t @ w_ih.T + b_ih + h @ w_hh.T + b_hh
            i = jax.nn.sigmoid(z[:, 0 * H:1 * H])
            f = jax.nn.sigmoid(z[:, 1 * H:2 * H])
            g = jnp.tanh(z[:, 2 * H:3 * H])
            o = jax.nn.sigmoid(z[:, 3 * H:4 * H])
            c = f * c + i * g
            h = o * jnp.tanh(c)
            return (h, c), h

        init = (jnp.zeros((B, H), jnp.float32), jnp.zeros((B, H), jnp.float32))
        _, seq = jax.lax.scan(step, init, seq)
    idx = jnp.clip(seq_lengths - 1, 0, T - 1)
    last = seq[idx, jnp.arange(B)]                                   # (B, H)
    return jnp.maximum(last, 0.0) @ raw["fc_w"].T + raw["fc_b"]


if __name__ == "__main__":
    # args: num_nodes=4, input_dim=2, rnn_units=32, num_rnn_layers=2, dropout=0.0
    batch = 2
    max_seq_len = 8
    num_nodes = 4
    input_dim = 2
    rnn_units = 32
    num_rnn_layers = 2
    num_classes = 3

    key = jax.random.PRNGKey(0)
    key, kx = jax.random.split(key)
    inputs = jax.random.normal(
        kx, (batch, max_seq_len, num_nodes, input_dim), jnp.float32)
    seq_lengths = jnp.array([8, 5], dtype=jnp.int32)

    raw = make_params(key, input_dim * num_nodes, rnn_units,
                      num_rnn_layers, num_classes)
    params = prepare_params(raw)

    logits = lstm_model_forward(inputs, seq_lengths, params)
    logits = jax.block_until_ready(logits)
    assert logits.shape == (batch, num_classes)

    ref = _reference_forward(inputs, seq_lengths, raw)
    assert jnp.allclose(logits, ref, atol=1e-3, rtol=1e-3), (logits, ref)
    print("KERNEL_OK")
</pallas_src>

<mosaic_0001>
module attributes {stable_mosaic.version = 11 : i64} {
  func.func @kernel(%arg0: i32, %arg1: memref<8x1xi32, #tpu.memory_space<vmem>>, %arg2: memref<8x8x128xf32, #tpu.memory_space<vmem>>, %arg3: memref<32x128xf32, #tpu.memory_space<vmem>>, %arg4: memref<32x128xf32, #tpu.memory_space<vmem>>, %arg5: memref<32x128xf32, #tpu.memory_space<vmem>>, %arg6: memref<1x128xf32, #tpu.memory_space<vmem>>, %arg7: memref<32x128xf32, #tpu.memory_space<vmem>>, %arg8: memref<1x128xf32, #tpu.memory_space<vmem>>, %arg9: memref<8x128xf32, #tpu.memory_space<vmem>>, %arg10: memref<5x8x32xf32, #tpu.memory_space<vmem>>) attributes {dimension_semantics = [#tpu.dimension_semantics<arbitrary>], iteration_bounds = array<i64: 1>, scalar_prefetch = 0 : i64, scratch_operands = 1 : i64, tpu.core_type = #tpu.core_type<tc>, window_params = [{pipeline_mode = #tpu.pipeline_mode<synchronous>, transform_indices = @transform_0, window_bounds = array<i64: 8, 1>}, {transform_indices = @transform_1, window_bounds = array<i64: 8, 8, 128>}, {pipeline_mode = #tpu.pipeline_mode<synchronous>, transform_indices = @transform_2, window_bounds = array<i64: 32, 128>}, {pipeline_mode = #tpu.pipeline_mode<synchronous>, transform_indices = @transform_3, window_bounds = array<i64: 32, 128>}, {pipeline_mode = #tpu.pipeline_mode<synchronous>, transform_indices = @transform_4, window_bounds = array<i64: 32, 128>}, {pipeline_mode = #tpu.pipeline_mode<synchronous>, transform_indices = @transform_5, window_bounds = array<i64: 1, 128>}, {pipeline_mode = #tpu.pipeline_mode<synchronous>, transform_indices = @transform_6, window_bounds = array<i64: 32, 128>}, {pipeline_mode = #tpu.pipeline_mode<synchronous>, transform_indices = @transform_7, window_bounds = array<i64: 1, 128>}, {pipeline_mode = #tpu.pipeline_mode<synchronous>, transform_indices = @transform_8, window_bounds = array<i64: 8, 128>}]} {
    %c0_i32 = arith.constant 0 : i32
    %0 = arith.cmpi eq, %arg0, %c0_i32 : i32
    %1 = arith.extui %0 : i1 to i32
    %c0_i32_0 = arith.constant 0 : i32
    %2 = arith.cmpi ne, %1, %c0_i32_0 : i32
    scf.if %2 {
      %cst_102 = arith.constant 0.000000e+00 : f32
      %406 = vector.broadcast %cst_102 : f32 to vector<5x8x32xf32>
      %c0_103 = arith.constant 0 : index
      %c0_104 = arith.constant 0 : index
      %c0_105 = arith.constant 0 : index
      %407 = vector.load %arg10[%c0_103, %c0_104, %c0_105] : memref<5x8x32xf32, #tpu.memory_space<vmem>>, vector<5x8x32xf32>
      tpu.vector_store %arg10[%c0_103, %c0_104, %c0_105], %406 {strides = array<i32>} : memref<5x8x32xf32, #tpu.memory_space<vmem>>, vector<5x8x32xf32>,
    } else {
    }
    %c0 = arith.constant 0 : index
    %c0_1 = arith.constant 0 : index
    %3 = vector.load %arg1[%c0, %c0_1] : memref<8x1xi32, #tpu.memory_space<vmem>>, vector<8x1xi32>
    %c0_2 = arith.constant 0 : index
    %c0_3 = arith.constant 0 : index
    %4 = vector.load %arg3[%c0_2, %c0_3] : memref<32x128xf32, #tpu.memory_space<vmem>>, vector<32x128xf32>
    %c0_4 = arith.constant 0 : index
    %c0_5 = arith.constant 0 : index
    %5 = vector.load %arg5[%c0_4, %c0_5] : memref<32x128xf32, #tpu.memory_space<vmem>>, vector<32x128xf32>
    %c0_6 = arith.constant 0 : index
    %c0_7 = arith.constant 0 : index
    %6 = vector.load %arg4[%c0_6, %c0_7] : memref<32x128xf32, #tpu.memory_space<vmem>>, vector<32x128xf32>
    %c0_8 = arith.constant 0 : index
    %c0_9 = arith.constant 0 : index
    %7 = vector.load %arg6[%c0_8, %c0_9] : memref<1x128xf32, #tpu.memory_space<vmem>>, vector<1x128xf32>
    %8 = vector.shape_cast %7 : vector<1x128xf32> to vector<1x128xf32>
    %9 = vector.broadcast %8 : vector<1x128xf32> to vector<8x128xf32>
    %c0_10 = arith.constant 0 : index
    %c0_11 = arith.constant 0 : index
    %c0_12 = arith.constant 0 : index
    %10 = vector.load %arg10[%c0_10, %c0_11, %c0_12] : memref<5x8x32xf32, #tpu.memory_space<vmem>>, vector<1x8x32xf32>
    %11 = vector.shape_cast %10 : vector<1x8x32xf32> to vector<8x32xf32>
    %c1 = arith.constant 1 : index
    %c0_13 = arith.constant 0 : index
    %c0_14 = arith.constant 0 : index
    %12 = vector.load %arg10[%c1, %c0_13, %c0_14] : memref<5x8x32xf32, #tpu.memory_space<vmem>>, vector<1x8x32xf32>
    %13 = vector.shape_cast %12 : vector<1x8x32xf32> to vector<8x32xf32>
    %c2 = arith.constant 2 : index
    %c0_15 = arith.constant 0 : index
    %c0_16 = arith.constant 0 : index
    %14 = vector.load %arg10[%c2, %c0_15, %c0_16] : memref<5x8x32xf32, #tpu.memory_space<vmem>>, vector<1x8x32xf32>
    %15 = vector.shape_cast %14 : vector<1x8x32xf32> to vector<8x32xf32>
    %c3 = arith.constant 3 : index
    %c0_17 = arith.constant 0 : index
    %c0_18 = arith.constant 0 : index
    %16 = vector.load %arg10[%c3, %c0_17, %c0_18] : memref<5x8x32xf32, #tpu.memory_space<vmem>>, vector<1x8x32xf32>
    %17 = vector.shape_cast %16 : vector<1x8x32xf32> to vector<8x32xf32>
    %c4 = arith.constant 4 : index
    %c0_19 = arith.constant 0 : index
    %c0_20 = arith.constant 0 : index
    %18 = vector.load %arg10[%c4, %c0_19, %c0_20] : memref<5x8x32xf32, #tpu.memory_space<vmem>>, vector<1x8x32xf32>
    %19 = vector.shape_cast %18 : vector<1x8x32xf32> to vector<8x32xf32>
    %c0_i32_21 = arith.constant 0 : i32
    %20 = arith.index_cast %c0_i32_21 : i32 to index
    %c0_22 = arith.constant 0 : index
    %c0_23 = arith.constant 0 : index
    %21 = vector.load %arg2[%20, %c0_22, %c0_23] : memref<8x8x128xf32, #tpu.memory_space<vmem>>, vector<1x8x128xf32>
    %22 = vector.shape_cast %21 : vector<1x8x128xf32> to vector<8x128xf32>
    %cst = arith.constant dense<0.000000e+00> : vector<8x128xf32>
    %23 = tpu.matmul %11, %4, %cst {dimension_numbers = #tpu.dot_dimension_numbers<[1], [0], [0], [1], [0, 0, 1, 1], [], []>} : vector<8x32xf32>, vector<32x128xf32>, vector<8x128xf32> -> vector<8x128xf32>
    %24 = arith.addf %22, %23 : vector<8x128xf32>
    %25 = arith.negf %24 : vector<8x128xf32>
    %26 = math.exp %25 : vector<8x128xf32>
    %cst_24 = arith.constant 1.000000e+00 : f32
    %27 = vector.broadcast %cst_24 : f32 to vector<8x128xf32>
    %28 = arith.addf %27, %26 : vector<8x128xf32>
    %29 = arith.divf %27, %28 : vector<8x128xf32>
    %30 = math.tanh %24 : vector<8x128xf32>
    %31 = vector.extract_strided_slice %29 {offsets = [0, 0], sizes = [8, 32], strides = [1, 1]} : vector<8x128xf32> to vector<8x32xf32>
    %32 = vector.extract_strided_slice %29 {offsets = [0, 32], sizes = [8, 32], strides = [1, 1]} : vector<8x128xf32> to vector<8x32xf32>
    %33 = vector.extract_strided_slice %30 {offsets = [0, 64], sizes = [8, 32], strides = [1, 1]} : vector<8x128xf32> to vector<8x32xf32>
    %34 = vector.extract_strided_slice %29 {offsets = [0, 96], sizes = [8, 32], strides = [1, 1]} : vector<8x128xf32> to vector<8x32xf32>
    %35 = arith.mulf %32, %15 : vector<8x32xf32>
    %36 = arith.mulf %31, %33 : vector<8x32xf32>
    %37 = arith.addf %35, %36 : vector<8x32xf32>
    %38 = math.tanh %37 : vector<8x32xf32>
    %39 = arith.mulf %34, %38 : vector<8x32xf32>
    %cst_25 = arith.constant dense<0.000000e+00> : vector<8x128xf32>
    %40 = tpu.matmul %39, %6, %cst_25 {dimension_numbers = #tpu.dot_dimension_numbers<[1], [0], [0], [1], [0, 0, 1, 1], [], []>} : vector<8x32xf32>, vector<32x128xf32>, vector<8x128xf32> -> vector<8x128xf32>
    %cst_26 = arith.constant dense<0.000000e+00> : vector<8x128xf32>
    %41 = tpu.matmul %13, %5, %cst_26 {dimension_numbers = #tpu.dot_dimension_numbers<[1], [0], [0], [1], [0, 0, 1, 1], [], []>} : vector<8x32xf32>, vector<32x128xf32>, vector<8x128xf32> -> vector<8x128xf32>
    %42 = arith.addf %40, %41 : vector<8x128xf32>
    %43 = arith.addf %42, %9 : vector<8x128xf32>
    %44 = arith.negf %43 : vector<8x128xf32>
    %45 = math.exp %44 : vector<8x128xf32>
    %cst_27 = arith.constant 1.000000e+00 : f32
    %46 = vector.broadcast %cst_27 : f32 to vector<8x128xf32>
    %47 = arith.addf %46, %45 : vector<8x128xf32>
    %48 = arith.divf %46, %47 : vector<8x128xf32>
    %49 = math.tanh %43 : vector<8x128xf32>
    %50 = vector.extract_strided_slice %48 {offsets = [0, 0], sizes = [8, 32], strides = [1, 1]} : vector<8x128xf32> to vector<8x32xf32>
    %51 = vector.extract_strided_slice %48 {offsets = [0, 32], sizes = [8, 32], strides = [1, 1]} : vector<8x128xf32> to vector<8x32xf32>
    %52 = vector.extract_strided_slice %49 {offsets = [0, 64], sizes = [8, 32], strides = [1, 1]} : vector<8x128xf32> to vector<8x32xf32>
    %53 = vector.extract_strided_slice %48 {offsets = [0, 96], sizes = [8, 32], strides = [1, 1]} : vector<8x128xf32> to vector<8x32xf32>
    %54 = arith.mulf %51, %17 : vector<8x32xf32>
    %55 = arith.mulf %50, %52 : vector<8x32xf32>
    %56 = arith.addf %54, %55 : vector<8x32xf32>
    %57 = math.tanh %56 : vector<8x32xf32>
    %58 = arith.mulf %53, %57 : vector<8x32xf32>
    %c8_i32 = arith.constant 8 : i32
    %59 = arith.muli %arg0, %c8_i32 : i32
    %60 = arith.addi %59, %c0_i32_21 : i32
    %61 = vector.broadcast %60 : i32 to vector<8x1xi32>
    %62 = arith.cmpi eq, %3, %61 : vector<8x1xi32>
    %63 = vector.shape_cast %62 : vector<8x1xi1> to vector<8x1xi1>
    %64 = vector.broadcast %63 : vector<8x1xi1> to vector<8x32xi1>
    %65 = arith.select %64, %58, %19 : vector<8x32xi1>, vector<8x32xf32>
    %c1_i32 = arith.constant 1 : i32
    %66 = arith.index_cast %c1_i32 : i32 to index
    %c0_28 = arith.constant 0 : index
    %c0_29 = arith.constant 0 : index
    %67 = vector.load %arg2[%66, %c0_28, %c0_29] : memref<8x8x128xf32, #tpu.memory_space<vmem>>, vector<1x8x128xf32>
    %68 = vector.shape_cast %67 : vector<1x8x128xf32> to vector<8x128xf32>
    %cst_30 = arith.constant dense<0.000000e+00> : vector<8x128xf32>
    %69 = tpu.matmul %39, %4, %cst_30 {dimension_numbers = #tpu.dot_dimension_numbers<[1], [0], [0], [1], [0, 0, 1, 1], [], []>} : vector<8x32xf32>, vector<32x128xf32>, vector<8x128xf32> -> vector<8x128xf32>
    %70 = arith.addf %68, %69 : vector<8x128xf32>
    %71 = arith.negf %70 : vector<8x128xf32>
    %72 = math.exp %71 : vector<8x128xf32>
    %cst_31 = arith.constant 1.000000e+00 : f32
    %73 = vector.broadcast %cst_31 : f32 to vector<8x128xf32>
    %74 = arith.addf %73, %72 : vector<8x128xf32>
    %75 = arith.divf %73, %74 : vector<8x128xf32>
    %76 = math.tanh %70 : vector<8x128xf32>
    %77 = vector.extract_strided_slice %75 {offsets = [0, 0], sizes = [8, 32], strides = [1, 1]} : vector<8x128xf32> to vector<8x32xf32>
    %78 = vector.extract_strided_slice %75 {offsets = [0, 32], sizes = [8, 32], strides = [1, 1]} : vector<8x128xf32> to vector<8x32xf32>
    %79 = vector.extract_strided_slice %76 {offsets = [0, 64], sizes = [8, 32], strides = [1, 1]} : vector<8x128xf32> to vector<8x32xf32>
    %80 = vector.extract_strided_slice %75 {offsets = [0, 96], sizes = [8, 32], strides = [1, 1]} : vector<8x128xf32> to vector<8x32xf32>
    %81 = arith.mulf %78, %37 : vector<8x32xf32>
    %82 = arith.mulf %77, %79 : vector<8x32xf32>
    %83 = arith.addf %81, %82 : vector<8x32xf32>
    %84 = math.tanh %83 : vector<8x32xf32>
    %85 = arith.mulf %80, %84 : vector<8x32xf32>
    %cst_32 = arith.constant dense<0.000000e+00> : vector<8x128xf32>
    %86 = tpu.matmul %85, %6, %cst_32 {dimension_numbers = #tpu.dot_dimension_numbers<[1], [0], [0], [1], [0, 0, 1, 1], [], []>} : vector<8x32xf32>, vector<32x128xf32>, vector<8x128xf32> -> vector<8x128xf32>
    %cst_33 = arith.constant dense<0.000000e+00> : vector<8x128xf32>
    %87 = tpu.matmul %58, %5, %cst_33 {dimension_numbers = #tpu.dot_dimension_numbers<[1], [0], [0], [1], [0, 0, 1, 1], [], []>} : vector<8x32xf32>, vector<32x128xf32>, vector<8x128xf32> -> vector<8x128xf32>
    %88 = arith.addf %86, %87 : vector<8x128xf32>
    %89 = arith.addf %88, %9 : vector<8x128xf32>
    %90 = arith.negf %89 : vector<8x128xf32>
    %91 = math.exp %90 : vector<8x128xf32>
    %cst_34 = arith.constant 1.000000e+00 : f32
    %92 = vector.broadcast %cst_34 : f32 to vector<8x128xf32>
    %93 = arith.addf %92, %91 : vector<8x128xf32>
    %94 = arith.divf %92, %93 : vector<8x128xf32>
    %95 = math.tanh %89 : vector<8x128xf32>
    %96 = vector.extract_strided_slice %94 {offsets = [0, 0], sizes = [8, 32], strides = [1, 1]} : vector<8x128xf32> to vector<8x32xf32>
    %97 = vector.extract_strided_slice %94 {offsets = [0, 32], sizes = [8, 32], strides = [1, 1]} : vector<8x128xf32> to vector<8x32xf32>
    %98 = vector.extract_strided_slice %95 {offsets = [0, 64], sizes = [8, 32], strides = [1, 1]} : vector<8x128xf32> to vector<8x32xf32>
    %99 = vector.extract_strided_slice %94 {offsets = [0, 96], sizes = [8, 32], strides = [1, 1]} : vector<8x128xf32> to vector<8x32xf32>
    %100 = arith.mulf %97, %56 : vector<8x32xf32>
    %101 = arith.mulf %96, %98 : vector<8x32xf32>
    %102 = arith.addf %100, %101 : vector<8x32xf32>
    %103 = math.tanh %102 : vector<8x32xf32>
    %104 = arith.mulf %99, %103 : vector<8x32xf32>
    %c8_i32_35 = arith.constant 8 : i32
    %105 = arith.muli %arg0, %c8_i32_35 : i32
    %106 = arith.addi %105, %c1_i32 : i32
    %107 = vector.broadcast %106 : i32 to vector<8x1xi32>
    %108 = arith.cmpi eq, %3, %107 : vector<8x1xi32>
    %109 = vector.shape_cast %108 : vector<8x1xi1> to vector<8x1xi1>
    %110 = vector.broadcast %109 : vector<8x1xi1> to vector<8x32xi1>
    %111 = arith.select %110, %104, %65 : vector<8x32xi1>, vector<8x32xf32>
    %c2_i32 = arith.constant 2 : i32
    %112 = arith.index_cast %c2_i32 : i32 to index
    %c0_36 = arith.constant 0 : index
    %c0_37 = arith.constant 0 : index
    %113 = vector.load %arg2[%112, %c0_36, %c0_37] : memref<8x8x128xf32, #tpu.memory_space<vmem>>, vector<1x8x128xf32>
    %114 = vector.shape_cast %113 : vector<1x8x128xf32> to vector<8x128xf32>
    %cst_38 = arith.constant dense<0.000000e+00> : vector<8x128xf32>
    %115 = tpu.matmul %85, %4, %cst_38 {dimension_numbers = #tpu.dot_dimension_numbers<[1], [0], [0], [1], [0, 0, 1, 1], [], []>} : vector<8x32xf32>, vector<32x128xf32>, vector<8x128xf32> -> vector<8x128xf32>
    %116 = arith.addf %114, %115 : vector<8x128xf32>
    %117 = arith.negf %116 : vector<8x128xf32>
    %118 = math.exp %117 : vector<8x128xf32>
    %cst_39 = arith.constant 1.000000e+00 : f32
    %119 = vector.broadcast %cst_39 : f32 to vector<8x128xf32>
    %120 = arith.addf %119, %118 : vector<8x128xf32>
    %121 = arith.divf %119, %120 : vector<8x128xf32>
    %122 = math.tanh %116 : vector<8x128xf32>
    %123 = vector.extract_strided_slice %121 {offsets = [0, 0], sizes = [8, 32], strides = [1, 1]} : vector<8x128xf32> to vector<8x32xf32>
    %124 = vector.extract_strided_slice %121 {offsets = [0, 32], sizes = [8, 32], strides = [1, 1]} : vector<8x128xf32> to vector<8x32xf32>
    %125 = vector.extract_strided_slice %122 {offsets = [0, 64], sizes = [8, 32], strides = [1, 1]} : vector<8x128xf32> to vector<8x32xf32>
    %126 = vector.extract_strided_slice %121 {offsets = [0, 96], sizes = [8, 32], strides = [1, 1]} : vector<8x128xf32> to vector<8x32xf32>
    %127 = arith.mulf %124, %83 : vector<8x32xf32>
    %128 = arith.mulf %123, %125 : vector<8x32xf32>
    %129 = arith.addf %127, %128 : vector<8x32xf32>
    %130 = math.tanh %129 : vector<8x32xf32>
    %131 = arith.mulf %126, %130 : vector<8x32xf32>
    %cst_40 = arith.constant dense<0.000000e+00> : vector<8x128xf32>
    %132 = tpu.matmul %131, %6, %cst_40 {dimension_numbers = #tpu.dot_dimension_numbers<[1], [0], [0], [1], [0, 0, 1, 1], [], []>} : vector<8x32xf32>, vector<32x128xf32>, vector<8x128xf32> -> vector<8x128xf32>
    %cst_41 = arith.constant dense<0.000000e+00> : vector<8x128xf32>
    %133 = tpu.matmul %104, %5, %cst_41 {dimension_numbers = #tpu.dot_dimension_numbers<[1], [0], [0], [1], [0, 0, 1, 1], [], []>} : vector<8x32xf32>, vector<32x128xf32>, vector<8x128xf32> -> vector<8x128xf32>
    %134 = arith.addf %132, %133 : vector<8x128xf32>
    %135 = arith.addf %134, %9 : vector<8x128xf32>
    %136 = arith.negf %135 : vector<8x128xf32>
    %137 = math.exp %136 : vector<8x128xf32>
    %cst_42 = arith.constant 1.000000e+00 : f32
    %138 = vector.broadcast %cst_42 : f32 to vector<8x128xf32>
    %139 = arith.addf %138, %137 : vector<8x128xf32>
    %140 = arith.divf %138, %139 : vector<8x128xf32>
    %141 = math.tanh %135 : vector<8x128xf32>
    %142 = vector.extract_strided_slice %140 {offsets = [0, 0], sizes = [8, 32], strides = [1, 1]} : vector<8x128xf32> to vector<8x32xf32>
    %143 = vector.extract_strided_slice %140 {offsets = [0, 32], sizes = [8, 32], strides = [1, 1]} : vector<8x128xf32> to vector<8x32xf32>
    %144 = vector.extract_strided_slice %141 {offsets = [0, 64], sizes = [8, 32], strides = [1, 1]} : vector<8x128xf32> to vector<8x32xf32>
    %145 = vector.extract_strided_slice %140 {offsets = [0, 96], sizes = [8, 32], strides = [1, 1]} : vector<8x128xf32> to vector<8x32xf32>
    %146 = arith.mulf %143, %102 : vector<8x32xf32>
    %147 = arith.mulf %142, %144 : vector<8x32xf32>
    %148 = arith.addf %146, %147 : vector<8x32xf32>
    %149 = math.tanh %148 : vector<8x32xf32>
    %150 = arith.mulf %145, %149 : vector<8x32xf32>
    %c8_i32_43 = arith.constant 8 : i32
    %151 = arith.muli %arg0, %c8_i32_43 : i32
    %152 = arith.addi %151, %c2_i32 : i32
    %153 = vector.broadcast %152 : i32 to vector<8x1xi32>
    %154 = arith.cmpi eq, %3, %153 : vector<8x1xi32>
    %155 = vector.shape_cast %154 : vector<8x1xi1> to vector<8x1xi1>
    %156 = vector.broadcast %155 : vector<8x1xi1> to vector<8x32xi1>
    %157 = arith.select %156, %150, %111 : vector<8x32xi1>, vector<8x32xf32>
    %c3_i32 = arith.constant 3 : i32
    %158 = arith.index_cast %c3_i32 : i32 to index
    %c0_44 = arith.constant 0 : index
    %c0_45 = arith.constant 0 : index
    %159 = vector.load %arg2[%158, %c0_44, %c0_45] : memref<8x8x128xf32, #tpu.memory_space<vmem>>, vector<1x8x128xf32>
    %160 = vector.shape_cast %159 : vector<1x8x128xf32> to vector<8x128xf32>
    %cst_46 = arith.constant dense<0.000000e+00> : vector<8x128xf32>
    %161 = tpu.matmul %131, %4, %cst_46 {dimension_numbers = #tpu.dot_dimension_numbers<[1], [0], [0], [1], [0, 0, 1, 1], [], []>} : vector<8x32xf32>, vector<32x128xf32>, vector<8x128xf32> -> vector<8x128xf32>
    %162 = arith.addf %160, %161 : vector<8x128xf32>
    %163 = arith.negf %162 : vector<8x128xf32>
    %164 = math.exp %163 : vector<8x128xf32>
    %cst_47 = arith.constant 1.000000e+00 : f32
    %165 = vector.broadcast %cst_47 : f32 to vector<8x128xf32>
    %166 = arith.addf %165, %164 : vector<8x128xf32>
    %167 = arith.divf %165, %166 : vector<8x128xf32>
    %168 = math.tanh %162 : vector<8x128xf32>
    %169 = vector.extract_strided_slice %167 {offsets = [0, 0], sizes = [8, 32], strides = [1, 1]} : vector<8x128xf32> to vector<8x32xf32>
    %170 = vector.extract_strided_slice %167 {offsets = [0, 32], sizes = [8, 32], strides = [1, 1]} : vector<8x128xf32> to vector<8x32xf32>
    %171 = vector.extract_strided_slice %168 {offsets = [0, 64], sizes = [8, 32], strides = [1, 1]} : vector<8x128xf32> to vector<8x32xf32>
    %172 = vector.extract_strided_slice %167 {offsets = [0, 96], sizes = [8, 32], strides = [1, 1]} : vector<8x128xf32> to vector<8x32xf32>
    %173 = arith.mulf %170, %129 : vector<8x32xf32>
    %174 = arith.mulf %169, %171 : vector<8x32xf32>
    %175 = arith.addf %173, %174 : vector<8x32xf32>
    %176 = math.tanh %175 : vector<8x32xf32>
    %177 = arith.mulf %172, %176 : vector<8x32xf32>
    %cst_48 = arith.constant dense<0.000000e+00> : vector<8x128xf32>
    %178 = tpu.matmul %177, %6, %cst_48 {dimension_numbers = #tpu.dot_dimension_numbers<[1], [0], [0], [1], [0, 0, 1, 1], [], []>} : vector<8x32xf32>, vector<32x128xf32>, vector<8x128xf32> -> vector<8x128xf32>
    %cst_49 = arith.constant dense<0.000000e+00> : vector<8x128xf32>
    %179 = tpu.matmul %150, %5, %cst_49 {dimension_numbers = #tpu.dot_dimension_numbers<[1], [0], [0], [1], [0, 0, 1, 1], [], []>} : vector<8x32xf32>, vector<32x128xf32>, vector<8x128xf32> -> vector<8x128xf32>
    %180 = arith.addf %178, %179 : vector<8x128xf32>
    %181 = arith.addf %180, %9 : vector<8x128xf32>
    %182 = arith.negf %181 : vector<8x128xf32>
    %183 = math.exp %182 : vector<8x128xf32>
    %cst_50 = arith.constant 1.000000e+00 : f32
    %184 = vector.broadcast %cst_50 : f32 to vector<8x128xf32>
    %185 = arith.addf %184, %183 : vector<8x128xf32>
    %186 = arith.divf %184, %185 : vector<8x128xf32>
    %187 = math.tanh %181 : vector<8x128xf32>
    %188 = vector.extract_strided_slice %186 {offsets = [0, 0], sizes = [8, 32], strides = [1, 1]} : vector<8x128xf32> to vector<8x32xf32>
    %189 = vector.extract_strided_slice %186 {offsets = [0, 32], sizes = [8, 32], strides = [1, 1]} : vector<8x128xf32> to vector<8x32xf32>
    %190 = vector.extract_strided_slice %187 {offsets = [0, 64], sizes = [8, 32], strides = [1, 1]} : vector<8x128xf32> to vector<8x32xf32>
    %191 = vector.extract_strided_slice %186 {offsets = [0, 96], sizes = [8, 32], strides = [1, 1]} : vector<8x128xf32> to vector<8x32xf32>
    %192 = arith.mulf %189, %148 : vector<8x32xf32>
    %193 = arith.mulf %188, %190 : vector<8x32xf32>
    %194 = arith.addf %192, %193 : vector<8x32xf32>
    %195 = math.tanh %194 : vector<8x32xf32>
    %196 = arith.mulf %191, %195 : vector<8x32xf32>
    %c8_i32_51 = arith.constant 8 : i32
    %197 = arith.muli %arg0, %c8_i32_51 : i32
    %198 = arith.addi %197, %c3_i32 : i32
    %199 = vector.broadcast %198 : i32 to vector<8x1xi32>
    %200 = arith.cmpi eq, %3, %199 : vector<8x1xi32>
    %201 = vector.shape_cast %200 : vector<8x1xi1> to vector<8x1xi1>
    %202 = vector.broadcast %201 : vector<8x1xi1> to vector<8x32xi1>
    %203 = arith.select %202, %196, %157 : vector<8x32xi1>, vector<8x32xf32>
    %c4_i32 = arith.constant 4 : i32
    %204 = arith.index_cast %c4_i32 : i32 to index
    %c0_52 = arith.constant 0 : index
    %c0_53 = arith.constant 0 : index
    %205 = vector.load %arg2[%204, %c0_52, %c0_53] : memref<8x8x128xf32, #tpu.memory_space<vmem>>, vector<1x8x128xf32>
    %206 = vector.shape_cast %205 : vector<1x8x128xf32> to vector<8x128xf32>
    %cst_54 = arith.constant dense<0.000000e+00> : vector<8x128xf32>
    %207 = tpu.matmul %177, %4, %cst_54 {dimension_numbers = #tpu.dot_dimension_numbers<[1], [0], [0], [1], [0, 0, 1, 1], [], []>} : vector<8x32xf32>, vector<32x128xf32>, vector<8x128xf32> -> vector<8x128xf32>
    %208 = arith.addf %206, %207 : vector<8x128xf32>
    %209 = arith.negf %208 : vector<8x128xf32>
    %210 = math.exp %209 : vector<8x128xf32>
    %cst_55 = arith.constant 1.000000e+00 : f32
    %211 = vector.broadcast %cst_55 : f32 to vector<8x128xf32>
    %212 = arith.addf %211, %210 : vector<8x128xf32>
    %213 = arith.divf %211, %212 : vector<8x128xf32>
    %214 = math.tanh %208 : vector<8x128xf32>
    %215 = vector.extract_strided_slice %213 {offsets = [0, 0], sizes = [8, 32], strides = [1, 1]} : vector<8x128xf32> to vector<8x32xf32>
    %216 = vector.extract_strided_slice %213 {offsets = [0, 32], sizes = [8, 32], strides = [1, 1]} : vector<8x128xf32> to vector<8x32xf32>
    %217 = vector.extract_strided_slice %214 {offsets = [0, 64], sizes = [8, 32], strides = [1, 1]} : vector<8x128xf32> to vector<8x32xf32>
    %218 = vector.extract_strided_slice %213 {offsets = [0, 96], sizes = [8, 32], strides = [1, 1]} : vector<8x128xf32> to vector<8x32xf32>
    %219 = arith.mulf %216, %175 : vector<8x32xf32>
    %220 = arith.mulf %215, %217 : vector<8x32xf32>
    %221 = arith.addf %219, %220 : vector<8x32xf32>
    %222 = math.tanh %221 : vector<8x32xf32>
    %223 = arith.mulf %218, %222 : vector<8x32xf32>
    %cst_56 = arith.constant dense<0.000000e+00> : vector<8x128xf32>
    %224 = tpu.matmul %223, %6, %cst_56 {dimension_numbers = #tpu.dot_dimension_numbers<[1], [0], [0], [1], [0, 0, 1, 1], [], []>} : vector<8x32xf32>, vector<32x128xf32>, vector<8x128xf32> -> vector<8x128xf32>
    %cst_57 = arith.constant dense<0.000000e+00> : vector<8x128xf32>
    %225 = tpu.matmul %196, %5, %cst_57 {dimension_numbers = #tpu.dot_dimension_numbers<[1], [0], [0], [1], [0, 0, 1, 1], [], []>} : vector<8x32xf32>, vector<32x128xf32>, vector<8x128xf32> -> vector<8x128xf32>
    %226 = arith.addf %224, %225 : vector<8x128xf32>
    %227 = arith.addf %226, %9 : vector<8x128xf32>
    %228 = arith.negf %227 : vector<8x128xf32>
    %229 = math.exp %228 : vector<8x128xf32>
    %cst_58 = arith.constant 1.000000e+00 : f32
    %230 = vector.broadcast %cst_58 : f32 to vector<8x128xf32>
    %231 = arith.addf %230, %229 : vector<8x128xf32>
    %232 = arith.divf %230, %231 : vector<8x128xf32>
    %233 = math.tanh %227 : vector<8x128xf32>
    %234 = vector.extract_strided_slice %232 {offsets = [0, 0], sizes = [8, 32], strides = [1, 1]} : vector<8x128xf32> to vector<8x32xf32>
    %235 = vector.extract_strided_slice %232 {offsets = [0, 32], sizes = [8, 32], strides = [1, 1]} : vector<8x128xf32> to vector<8x32xf32>
    %236 = vector.extract_strided_slice %233 {offsets = [0, 64], sizes = [8, 32], strides = [1, 1]} : vector<8x128xf32> to vector<8x32xf32>
    %237 = vector.extract_strided_slice %232 {offsets = [0, 96], sizes = [8, 32], strides = [1, 1]} : vector<8x128xf32> to vector<8x32xf32>
    %238 = arith.mulf %235, %194 : vector<8x32xf32>
    %239 = arith.mulf %234, %236 : vector<8x32xf32>
    %240 = arith.addf %238, %239 : vector<8x32xf32>
    %241 = math.tanh %240 : vector<8x32xf32>
    %242 = arith.mulf %237, %241 : vector<8x32xf32>
    %c8_i32_59 = arith.constant 8 : i32
    %243 = arith.muli %arg0, %c8_i32_59 : i32
    %244 = arith.addi %243, %c4_i32 : i32
    %245 = vector.broadcast %244 : i32 to vector<8x1xi32>
    %246 = arith.cmpi eq, %3, %245 : vector<8x1xi32>
    %247 = vector.shape_cast %246 : vector<8x1xi1> to vector<8x1xi1>
    %248 = vector.broadcast %247 : vector<8x1xi1> to vector<8x32xi1>
    %249 = arith.select %248, %242, %203 : vector<8x32xi1>, vector<8x32xf32>
    %c5_i32 = arith.constant 5 : i32
    %250 = arith.index_cast %c5_i32 : i32 to index
    %c0_60 = arith.constant 0 : index
    %c0_61 = arith.constant 0 : index
    %251 = vector.load %arg2[%250, %c0_60, %c0_61] : memref<8x8x128xf32, #tpu.memory_space<vmem>>, vector<1x8x128xf32>
    %252 = vector.shape_cast %251 : vector<1x8x128xf32> to vector<8x128xf32>
    %cst_62 = arith.constant dense<0.000000e+00> : vector<8x128xf32>
    %253 = tpu.matmul %223, %4, %cst_62 {dimension_numbers = #tpu.dot_dimension_numbers<[1], [0], [0], [1], [0, 0, 1, 1], [], []>} : vector<8x32xf32>, vector<32x128xf32>, vector<8x128xf32> -> vector<8x128xf32>
    %254 = arith.addf %252, %253 : vector<8x128xf32>
    %255 = arith.negf %254 : vector<8x128xf32>
    %256 = math.exp %255 : vector<8x128xf32>
    %cst_63 = arith.constant 1.000000e+00 : f32
    %257 = vector.broadcast %cst_63 : f32 to vector<8x128xf32>
    %258 = arith.addf %257, %256 : vector<8x128xf32>
    %259 = arith.divf %257, %258 : vector<8x128xf32>
    %260 = math.tanh %254 : vector<8x128xf32>
    %261 = vector.extract_strided_slice %259 {offsets = [0, 0], sizes = [8, 32], strides = [1, 1]} : vector<8x128xf32> to vector<8x32xf32>
    %262 = vector.extract_strided_slice %259 {offsets = [0, 32], sizes = [8, 32], strides = [1, 1]} : vector<8x128xf32> to vector<8x32xf32>
    %263 = vector.extract_strided_slice %260 {offsets = [0, 64], sizes = [8, 32], strides = [1, 1]} : vector<8x128xf32> to vector<8x32xf32>
    %264 = vector.extract_strided_slice %259 {offsets = [0, 96], sizes = [8, 32], strides = [1, 1]} : vector<8x128xf32> to vector<8x32xf32>
    %265 = arith.mulf %262, %221 : vector<8x32xf32>
    %266 = arith.mulf %261, %263 : vector<8x32xf32>
    %267 = arith.addf %265, %266 : vector<8x32xf32>
    %268 = math.tanh %267 : vector<8x32xf32>
    %269 = arith.mulf %264, %268 : vector<8x32xf32>
    %cst_64 = arith.constant dense<0.000000e+00> : vector<8x128xf32>
    %270 = tpu.matmul %269, %6, %cst_64 {dimension_numbers = #tpu.dot_dimension_numbers<[1], [0], [0], [1], [0, 0, 1, 1], [], []>} : vector<8x32xf32>, vector<32x128xf32>, vector<8x128xf32> -> vector<8x128xf32>
    %cst_65 = arith.constant dense<0.000000e+00> : vector<8x128xf32>
    %271 = tpu.matmul %242, %5, %cst_65 {dimension_numbers = #tpu.dot_dimension_numbers<[1], [0], [0], [1], [0, 0, 1, 1], [], []>} : vector<8x32xf32>, vector<32x128xf32>, vector<8x128xf32> -> vector<8x128xf32>
    %272 = arith.addf %270, %271 : vector<8x128xf32>
    %273 = arith.addf %272, %9 : vector<8x128xf32>
    %274 = arith.negf %273 : vector<8x128xf32>
    %275 = math.exp %274 : vector<8x128xf32>
    %cst_66 = arith.constant 1.000000e+00 : f32
    %276 = vector.broadcast %cst_66 : f32 to vector<8x128xf32>
    %277 = arith.addf %276, %275 : vector<8x128xf32>
    %278 = arith.divf %276, %277 : vector<8x128xf32>
    %279 = math.tanh %273 : vector<8x128xf32>
    %280 = vector.extract_strided_slice %278 {offsets = [0, 0], sizes = [8, 32], strides = [1, 1]} : vector<8x128xf32> to vector<8x32xf32>
    %281 = vector.extract_strided_slice %278 {offsets = [0, 32], sizes = [8, 32], strides = [1, 1]} : vector<8x128xf32> to vector<8x32xf32>
    %282 = vector.extract_strided_slice %279 {offsets = [0, 64], sizes = [8, 32], strides = [1, 1]} : vector<8x128xf32> to vector<8x32xf32>
    %283 = vector.extract_strided_slice %278 {offsets = [0, 96], sizes = [8, 32], strides = [1, 1]} : vector<8x128xf32> to vector<8x32xf32>
    %284 = arith.mulf %281, %240 : vector<8x32xf32>
    %285 = arith.mulf %280, %282 : vector<8x32xf32>
    %286 = arith.addf %284, %285 : vector<8x32xf32>
    %287 = math.tanh %286 : vector<8x32xf32>
    %288 = arith.mulf %283, %287 : vector<8x32xf32>
    %c8_i32_67 = arith.constant 8 : i32
    %289 = arith.muli %arg0, %c8_i32_67 : i32
    %290 = arith.addi %289, %c5_i32 : i32
    %291 = vector.broadcast %290 : i32 to vector<8x1xi32>
    %292 = arith.cmpi eq, %3, %291 : vector<8x1xi32>
    %293 = vector.shape_cast %292 : vector<8x1xi1> to vector<8x1xi1>
    %294 = vector.broadcast %293 : vector<8x1xi1> to vector<8x32xi1>
    %295 = arith.select %294, %288, %249 : vector<8x32xi1>, vector<8x32xf32>
    %c6_i32 = arith.constant 6 : i32
    %296 = arith.index_cast %c6_i32 : i32 to index
    %c0_68 = arith.constant 0 : index
    %c0_69 = arith.constant 0 : index
    %297 = vector.load %arg2[%296, %c0_68, %c0_69] : memref<8x8x128xf32, #tpu.memory_space<vmem>>, vector<1x8x128xf32>
    %298 = vector.shape_cast %297 : vector<1x8x128xf32> to vector<8x128xf32>
    %cst_70 = arith.constant dense<0.000000e+00> : vector<8x128xf32>
    %299 = tpu.matmul %269, %4, %cst_70 {dimension_numbers = #tpu.dot_dimension_numbers<[1], [0], [0], [1], [0, 0, 1, 1], [], []>} : vector<8x32xf32>, vector<32x128xf32>, vector<8x128xf32> -> vector<8x128xf32>
    %300 = arith.addf %298, %299 : vector<8x128xf32>
    %301 = arith.negf %300 : vector<8x128xf32>
    %302 = math.exp %301 : vector<8x128xf32>
    %cst_71 = arith.constant 1.000000e+00 : f32
    %303 = vector.broadcast %cst_71 : f32 to vector<8x128xf32>
    %304 = arith.addf %303, %302 : vector<8x128xf32>
    %305 = arith.divf %303, %304 : vector<8x128xf32>
    %306 = math.tanh %300 : vector<8x128xf32>
    %307 = vector.extract_strided_slice %305 {offsets = [0, 0], sizes = [8, 32], strides = [1, 1]} : vector<8x128xf32> to vector<8x32xf32>
    %308 = vector.extract_strided_slice %305 {offsets = [0, 32], sizes = [8, 32], strides = [1, 1]} : vector<8x128xf32> to vector<8x32xf32>
    %309 = vector.extract_strided_slice %306 {offsets = [0, 64], sizes = [8, 32], strides = [1, 1]} : vector<8x128xf32> to vector<8x32xf32>
    %310 = vector.extract_strided_slice %305 {offsets = [0, 96], sizes = [8, 32], strides = [1, 1]} : vector<8x128xf32> to vector<8x32xf32>
    %311 = arith.mulf %308, %267 : vector<8x32xf32>
    %312 = arith.mulf %307, %309 : vector<8x32xf32>
    %313 = arith.addf %311, %312 : vector<8x32xf32>
    %314 = math.tanh %313 : vector<8x32xf32>
    %315 = arith.mulf %310, %314 : vector<8x32xf32>
    %cst_72 = arith.constant dense<0.000000e+00> : vector<8x128xf32>
    %316 = tpu.matmul %315, %6, %cst_72 {dimension_numbers = #tpu.dot_dimension_numbers<[1], [0], [0], [1], [0, 0, 1, 1], [], []>} : vector<8x32xf32>, vector<32x128xf32>, vector<8x128xf32> -> vector<8x128xf32>
    %cst_73 = arith.constant dense<0.000000e+00> : vector<8x128xf32>
    %317 = tpu.matmul %288, %5, %cst_73 {dimension_numbers = #tpu.dot_dimension_numbers<[1], [0], [0], [1], [0, 0, 1, 1], [], []>} : vector<8x32xf32>, vector<32x128xf32>, vector<8x128xf32> -> vector<8x128xf32>
    %318 = arith.addf %316, %317 : vector<8x128xf32>
    %319 = arith.addf %318, %9 : vector<8x128xf32>
    %320 = arith.negf %319 : vector<8x128xf32>
    %321 = math.exp %320 : vector<8x128xf32>
    %cst_74 = arith.constant 1.000000e+00 : f32
    %322 = vector.broadcast %cst_74 : f32 to vector<8x128xf32>
    %323 = arith.addf %322, %321 : vector<8x128xf32>
    %324 = arith.divf %322, %323 : vector<8x128xf32>
    %325 = math.tanh %319 : vector<8x128xf32>
    %326 = vector.extract_strided_slice %324 {offsets = [0, 0], sizes = [8, 32], strides = [1, 1]} : vector<8x128xf32> to vector<8x32xf32>
    %327 = vector.extract_strided_slice %324 {offsets = [0, 32], sizes = [8, 32], strides = [1, 1]} : vector<8x128xf32> to vector<8x32xf32>
    %328 = vector.extract_strided_slice %325 {offsets = [0, 64], sizes = [8, 32], strides = [1, 1]} : vector<8x128xf32> to vector<8x32xf32>
    %329 = vector.extract_strided_slice %324 {offsets = [0, 96], sizes = [8, 32], strides = [1, 1]} : vector<8x128xf32> to vector<8x32xf32>
    %330 = arith.mulf %327, %286 : vector<8x32xf32>
    %331 = arith.mulf %326, %328 : vector<8x32xf32>
    %332 = arith.addf %330, %331 : vector<8x32xf32>
    %333 = math.tanh %332 : vector<8x32xf32>
    %334 = arith.mulf %329, %333 : vector<8x32xf32>
    %c8_i32_75 = arith.constant 8 : i32
    %335 = arith.muli %arg0, %c8_i32_75 : i32
    %336 = arith.addi %335, %c6_i32 : i32
    %337 = vector.broadcast %336 : i32 to vector<8x1xi32>
    %338 = arith.cmpi eq, %3, %337 : vector<8x1xi32>
    %339 = vector.shape_cast %338 : vector<8x1xi1> to vector<8x1xi1>
    %340 = vector.broadcast %339 : vector<8x1xi1> to vector<8x32xi1>
    %341 = arith.select %340, %334, %295 : vector<8x32xi1>, vector<8x32xf32>
    %c7_i32 = arith.constant 7 : i32
    %342 = arith.index_cast %c7_i32 : i32 to index
    %c0_76 = arith.constant 0 : index
    %c0_77 = arith.constant 0 : index
    %343 = vector.load %arg2[%342, %c0_76, %c0_77] : memref<8x8x128xf32, #tpu.memory_space<vmem>>, vector<1x8x128xf32>
    %344 = vector.shape_cast %343 : vector<1x8x128xf32> to vector<8x128xf32>
    %cst_78 = arith.constant dense<0.000000e+00> : vector<8x128xf32>
    %345 = tpu.matmul %315, %4, %cst_78 {dimension_numbers = #tpu.dot_dimension_numbers<[1], [0], [0], [1], [0, 0, 1, 1], [], []>} : vector<8x32xf32>, vector<32x128xf32>, vector<8x128xf32> -> vector<8x128xf32>
    %346 = arith.addf %344, %345 : vector<8x128xf32>
    %347 = arith.negf %346 : vector<8x128xf32>
    %348 = math.exp %347 : vector<8x128xf32>
    %cst_79 = arith.constant 1.000000e+00 : f32
    %349 = vector.broadcast %cst_79 : f32 to vector<8x128xf32>
    %350 = arith.addf %349, %348 : vector<8x128xf32>
    %351 = arith.divf %349, %350 : vector<8x128xf32>
    %352 = math.tanh %346 : vector<8x128xf32>
    %353 = vector.extract_strided_slice %351 {offsets = [0, 0], sizes = [8, 32], strides = [1, 1]} : vector<8x128xf32> to vector<8x32xf32>
    %354 = vector.extract_strided_slice %351 {offsets = [0, 32], sizes = [8, 32], strides = [1, 1]} : vector<8x128xf32> to vector<8x32xf32>
    %355 = vector.extract_strided_slice %352 {offsets = [0, 64], sizes = [8, 32], strides = [1, 1]} : vector<8x128xf32> to vector<8x32xf32>
    %356 = vector.extract_strided_slice %351 {offsets = [0, 96], sizes = [8, 32], strides = [1, 1]} : vector<8x128xf32> to vector<8x32xf32>
    %357 = arith.mulf %354, %313 : vector<8x32xf32>
    %358 = arith.mulf %353, %355 : vector<8x32xf32>
    %359 = arith.addf %357, %358 : vector<8x32xf32>
    %360 = math.tanh %359 : vector<8x32xf32>
    %361 = arith.mulf %356, %360 : vector<8x32xf32>
    %cst_80 = arith.constant dense<0.000000e+00> : vector<8x128xf32>
    %362 = tpu.matmul %361, %6, %cst_80 {dimension_numbers = #tpu.dot_dimension_numbers<[1], [0], [0], [1], [0, 0, 1, 1], [], []>} : vector<8x32xf32>, vector<32x128xf32>, vector<8x128xf32> -> vector<8x128xf32>
    %cst_81 = arith.constant dense<0.000000e+00> : vector<8x128xf32>
    %363 = tpu.matmul %334, %5, %cst_81 {dimension_numbers = #tpu.dot_dimension_numbers<[1], [0], [0], [1], [0, 0, 1, 1], [], []>} : vector<8x32xf32>, vector<32x128xf32>, vector<8x128xf32> -> vector<8x128xf32>
    %364 = arith.addf %362, %363 : vector<8x128xf32>
    %365 = arith.addf %364, %9 : vector<8x128xf32>
    %366 = arith.negf %365 : vector<8x128xf32>
    %367 = math.exp %366 : vector<8x128xf32>
    %cst_82 = arith.constant 1.000000e+00 : f32
    %368 = vector.broadcast %cst_82 : f32 to vector<8x128xf32>
    %369 = arith.addf %368, %367 : vector<8x128xf32>
    %370 = arith.divf %368, %369 : vector<8x128xf32>
    %371 = math.tanh %365 : vector<8x128xf32>
    %372 = vector.extract_strided_slice %370 {offsets = [0, 0], sizes = [8, 32], strides = [1, 1]} : vector<8x128xf32> to vector<8x32xf32>
    %373 = vector.extract_strided_slice %370 {offsets = [0, 32], sizes = [8, 32], strides = [1, 1]} : vector<8x128xf32> to vector<8x32xf32>
    %374 = vector.extract_strided_slice %371 {offsets = [0, 64], sizes = [8, 32], strides = [1, 1]} : vector<8x128xf32> to vector<8x32xf32>
    %375 = vector.extract_strided_slice %370 {offsets = [0, 96], sizes = [8, 32], strides = [1, 1]} : vector<8x128xf32> to vector<8x32xf32>
    %376 = arith.mulf %373, %332 : vector<8x32xf32>
    %377 = arith.mulf %372, %374 : vector<8x32xf32>
    %378 = arith.addf %376, %377 : vector<8x32xf32>
    %379 = math.tanh %378 : vector<8x32xf32>
    %380 = arith.mulf %375, %379 : vector<8x32xf32>
    %c8_i32_83 = arith.constant 8 : i32
    %381 = arith.muli %arg0, %c8_i32_83 : i32
    %382 = arith.addi %381, %c7_i32 : i32
    %383 = vector.broadcast %382 : i32 to vector<8x1xi32>
    %384 = arith.cmpi eq, %3, %383 : vector<8x1xi32>
    %385 = vector.shape_cast %384 : vector<8x1xi1> to vector<8x1xi1>
    %386 = vector.broadcast %385 : vector<8x1xi1> to vector<8x32xi1>
    %387 = arith.select %386, %380, %341 : vector<8x32xi1>, vector<8x32xf32>
    %c8_i32_84 = arith.constant 8 : i32
    %c0_85 = arith.constant 0 : index
    %c0_86 = arith.constant 0 : index
    %c0_87 = arith.constant 0 : index
    %388 = vector.load %arg10[%c0_85, %c0_86, %c0_87] : memref<5x8x32xf32, #tpu.memory_space<vmem>>, vector<1x8x32xf32>
    %389 = vector.shape_cast %388 : vector<1x8x32xf32> to vector<8x32xf32>
    %390 = vector.shape_cast %361 : vector<8x32xf32> to vector<1x8x32xf32>
    tpu.vector_store %arg10[%c0_85, %c0_86, %c0_87], %390 {strides = array<i32>} : memref<5x8x32xf32, #tpu.memory_space<vmem>>, vector<1x8x32xf32>,
    %c2_88 = arith.constant 2 : index
    %c0_89 = arith.constant 0 : index
    %c0_90 = arith.constant 0 : index
    %391 = vector.load %arg10[%c2_88, %c0_89, %c0_90] : memref<5x8x32xf32, #tpu.memory_space<vmem>>, vector<1x8x32xf32>
    %392 = vector.shape_cast %391 : vector<1x8x32xf32> to vector<8x32xf32>
    %393 = vector.shape_cast %359 : vector<8x32xf32> to vector<1x8x32xf32>
    tpu.vector_store %arg10[%c2_88, %c0_89, %c0_90], %393 {strides = array<i32>} : memref<5x8x32xf32, #tpu.memory_space<vmem>>, vector<1x8x32xf32>,
    %c1_91 = arith.constant 1 : index
    %c0_92 = arith.constant 0 : index
    %c0_93 = arith.constant 0 : index
    %394 = vector.load %arg10[%c1_91, %c0_92, %c0_93] : memref<5x8x32xf32, #tpu.memory_space<vmem>>, vector<1x8x32xf32>
    %395 = vector.shape_cast %394 : vector<1x8x32xf32> to vector<8x32xf32>
    %396 = vector.shape_cast %380 : vector<8x32xf32> to vector<1x8x32xf32>
    tpu.vector_store %arg10[%c1_91, %c0_92, %c0_93], %396 {strides = array<i32>} : memref<5x8x32xf32, #tpu.memory_space<vmem>>, vector<1x8x32xf32>,
    %c3_94 = arith.constant 3 : index
    %c0_95 = arith.constant 0 : index
    %c0_96 = arith.constant 0 : index
    %397 = vector.load %arg10[%c3_94, %c0_95, %c0_96] : memref<5x8x32xf32, #tpu.memory_space<vmem>>, vector<1x8x32xf32>
    %398 = vector.shape_cast %397 : vector<1x8x32xf32> to vector<8x32xf32>
    %399 = vector.shape_cast %378 : vector<8x32xf32> to vector<1x8x32xf32>
    tpu.vector_store %arg10[%c3_94, %c0_95, %c0_96], %399 {strides = array<i32>} : memref<5x8x32xf32, #tpu.memory_space<vmem>>, vector<1x8x32xf32>,
    %c4_97 = arith.constant 4 : index
    %c0_98 = arith.constant 0 : index
    %c0_99 = arith.constant 0 : index
    %400 = vector.load %arg10[%c4_97, %c0_98, %c0_99] : memref<5x8x32xf32, #tpu.memory_space<vmem>>, vector<1x8x32xf32>
    %401 = vector.shape_cast %400 : vector<1x8x32xf32> to vector<8x32xf32>
    %402 = vector.shape_cast %387 : vector<8x32xf32> to vector<1x8x32xf32>
    tpu.vector_store %arg10[%c4_97, %c0_98, %c0_99], %402 {strides = array<i32>} : memref<5x8x32xf32, #tpu.memory_space<vmem>>, vector<1x8x32xf32>,
    %c0_i32_100 = arith.constant 0 : i32
    %403 = arith.cmpi eq, %arg0, %c0_i32_100 : i32
    %404 = arith.extui %403 : i1 to i32
    %c0_i32_101 = arith.constant 0 : i32
    %405 = arith.cmpi ne, %404, %c0_i32_101 : i32
    scf.if %405 {
      %cst_102 = arith.constant 0.000000e+00 : f32
      %406 = vector.broadcast %cst_102 : f32 to vector<8x32xf32>
      %407 = arith.maximumf %387, %406 : vector<8x32xf32>
      %c0_103 = arith.constant 0 : index
      %c0_104 = arith.constant 0 : index
      %408 = vector.load %arg7[%c0_103, %c0_104] : memref<32x128xf32, #tpu.memory_space<vmem>>, vector<32x128xf32>
      %cst_105 = arith.constant dense<0.000000e+00> : vector<8x128xf32>
      %409 = tpu.matmul %407, %408, %cst_105 {dimension_numbers = #tpu.dot_dimension_numbers<[1], [0], [0], [1], [0, 0, 1, 1], [], []>} : vector<8x32xf32>, vector<32x128xf32>, vector<8x128xf32> -> vector<8x128xf32>
      %c0_106 = arith.constant 0 : index
      %c0_107 = arith.constant 0 : index
      %410 = vector.load %arg8[%c0_106, %c0_107] : memref<1x128xf32, #tpu.memory_space<vmem>>, vector<1x128xf32>
      %411 = vector.broadcast %410 : vector<1x128xf32> to vector<8x128xf32>
      %412 = arith.addf %409, %411 : vector<8x128xf32>
      %c0_108 = arith.constant 0 : index
      %c0_109 = arith.constant 0 : index
      %413 = vector.load %arg9[%c0_108, %c0_109] : memref<8x128xf32, #tpu.memory_space<vmem>>, vector<8x128xf32>
      tpu.vector_store %arg9[%c0_108, %c0_109], %412 {strides = array<i32>} : memref<8x128xf32, #tpu.memory_space<vmem>>, vector<8x128xf32>,
    } else {
    }
    return
  }
  func.func @transform_0(%arg0: i32) -> (i32, i32) {
    %c0_i32 = arith.constant 0 : i32
    %c0_i32_0 = arith.constant 0 : i32
    %c0_i32_1 = arith.constant 0 : i32
    return %c0_i32, %c0_i32_0 : i32, i32
  }
  func.func @transform_1(%arg0: i32) -> (i32, i32, i32) {
    %c0_i32 = arith.constant 0 : i32
    %c0_i32_0 = arith.constant 0 : i32
    %c0_i32_1 = arith.constant 0 : i32
    return %arg0, %c0_i32, %c0_i32_0 : i32, i32, i32
  }
  func.func @transform_2(%arg0: i32) -> (i32, i32) {
    %c0_i32 = arith.constant 0 : i32
    %c0_i32_0 = arith.constant 0 : i32
    %c0_i32_1 = arith.constant 0 : i32
    return %c0_i32, %c0_i32_0 : i32, i32
  }
  func.func @transform_3(%arg0: i32) -> (i32, i32) {
    %c0_i32 = arith.constant 0 : i32
    %c0_i32_0 = arith.constant 0 : i32
    %c0_i32_1 = arith.constant 0 : i32
    return %c0_i32, %c0_i32_0 : i32, i32
  }
  func.func @transform_4(%arg0: i32) -> (i32, i32) {
    %c0_i32 = arith.constant 0 : i32
    %c0_i32_0 = arith.constant 0 : i32
    %c0_i32_1 = arith.constant 0 : i32
    return %c0_i32, %c0_i32_0 : i32, i32
  }
  func.func @transform_5(%arg0: i32) -> (i32, i32) {
    %c0_i32 = arith.constant 0 : i32
    %c0_i32_0 = arith.constant 0 : i32
    %c0_i32_1 = arith.constant 0 : i32
    return %c0_i32, %c0_i32_0 : i32, i32
  }
  func.func @transform_6(%arg0: i32) -> (i32, i32) {
    %c0_i32 = arith.constant 0 : i32
    %c0_i32_0 = arith.constant 0 : i32
    %c0_i32_1 = arith.constant 0 : i32
    return %c0_i32, %c0_i32_0 : i32, i32
  }
  func.func @transform_7(%arg0: i32) -> (i32, i32) {
    %c0_i32 = arith.constant 0 : i32
    %c0_i32_0 = arith.constant 0 : i32
    %c0_i32_1 = arith.constant 0 : i32
    return %c0_i32, %c0_i32_0 : i32, i32
  }
  func.func @transform_8(%arg0: i32) -> (i32, i32) {
    %c0_i32 = arith.constant 0 : i32
    %c0_i32_0 = arith.constant 0 : i32
    %c0_i32_1 = arith.constant 0 : i32
    return %c0_i32, %c0_i32_0 : i32, i32
  }
}

</mosaic_0001>

<bundles_post_ra>
// kernel: lstm_model_forward.1
= control target key start
LH: loop header
LB: loop body
LE: loop exit
PB: predicated region body
PF: predicated region fallthrough
CT: control target
= control target key end

     0   :  { %vm33_vm0 = vcmask 261120   ;;  %v3183_v0 = vmov 0.0|0.0   ;;  %vm3184_vm1 = vmmov 0   ;;  %v3185_v4 = vmov 0.0   ;;  %s3186_s14 = smov 64   ;;  %s3187_s15 = smov 32   ;;  %s3685_s2 = inlined_call_operand.vmem [shape: f32[32,128], index: 2, kind: input, shape index: {}]   ;;  %s3686_s1 = inlined_call_operand.vmem [shape: f32[8,8,128], index: 1, kind: input, shape index: {}]   ;;  %s3687_s4 = inlined_call_operand.vmem [shape: f32[32,128], index: 4, kind: input, shape index: {}]   ;;  %s3688_s3 = inlined_call_operand.vmem [shape: f32[32,128], index: 3, kind: input, shape index: {}]   ;;  %s3689_s5 = inlined_call_operand.vmem [shape: f32[1,128], index: 5, kind: input, shape index: {}]   ;;  %s3690_s0 = inlined_call_operand.vmem [shape: s32[8,1], index: 0, kind: input, shape index: {}]   ;;  %s3691_s6 = inlined_call_operand.vmem [shape: f32[32,128], index: 6, kind: input, shape index: {}]   ;;  %s3692_s7 = inlined_call_operand.vmem [shape: f32[1,128], index: 7, kind: input, shape index: {}]   ;;  %s3693_s8 = inlined_call_operand.vmem [shape: f32[8,128], index: 8, kind: output, shape index: {}]  }
   0x1   :  { %2896 = vmatprep.subr.bf16.mxu0 %v3183_v0  ;;  %v40_v1 = vld [vmem:[%s3685_s2] sm:$0xff]  ;;  %v41_v2 = vld [vmem:[%s3685_s2 + $0x8] sm:$0xff]  ;;  %v42_v3 = vld [vmem:[%s3685_s2 + $0x10] sm:$0xff]  ;;  %2629 = vmatprep.mubr.msk.f32.mxu0 %vm3184_vm1, %v3185_v4  ;;  %34 = vst.msk [vmem:[#allocation2] sm:$0xff] %vm33_vm0, %v3185_v4 }
   0x2   :  { %35 = vst.msk [vmem:[#allocation2 + $0x8] sm:$0xff] %vm33_vm0, %v3185_v4  ;;  %36 = vst.msk [vmem:[#allocation2 + $0x10] sm:$0xff] %vm33_vm0, %v3185_v4  ;;  %v3257_v5 = vpack.c.bf16 %v41_v2, %v40_v1  ;;  %v43_v6 = vld [vmem:[%s3685_s2 + $0x18] sm:$0xff]  ;;  %2902 = vmatprep.subr.bf16.mxu1 %v3183_v0  ;;  %2640 = vmatprep.mubr.msk.f32.mxu1 %vm3184_vm1, %v3185_v4  ;;  %v68_v9 = vld [vmem:[%s3686_s1] sm:$0xff] }
   0x3   :  { %37 = vst.msk [vmem:[#allocation2 + $0x18] sm:$0xff] %vm33_vm0, %v3185_v4  ;;  %38 = vst.msk [vmem:[#allocation2 + $0x20] sm:$0xff] %vm33_vm0, %v3185_v4  ;;  %v3266_v7 = vpack.c.bf16 %v43_v6, %v42_v3  ;;  %v44_v25 = vld [vmem:[%s3687_s4] sm:$0xff]  ;;  %v45_v26 = vld [vmem:[%s3687_s4 + $0x8] sm:$0xff] }
   0x4   :  { %2898 = vmatpush3.bf16.msra.mxu0 %v3257_v5  ;;  %v46_v27 = vld [vmem:[%s3687_s4 + $0x10] sm:$0xff]  ;;  %v3292_v28 = vpack.c.bf16 %v45_v26, %v44_v25  ;;  %v47_v29 = vld [vmem:[%s3687_s4 + $0x18] sm:$0xff]  ;;  %v48_v30 = vld [vmem:[%s3688_s3] sm:$0xff] }
   0x5   :  { %2899 = vmatprep.subr.bf16.mxu0 %v3183_v0  ;;  %v49_v31 = vld [vmem:[%s3688_s3 + $0x8] sm:$0xff]  ;;  %v50_v33 = vld [vmem:[%s3688_s3 + $0x10] sm:$0xff]  ;;  %v51_v34 = vld [vmem:[%s3688_s3 + $0x18] sm:$0xff]  ;;  %v3312_v35 = vpack.c.bf16 %v47_v29, %v46_v27 }
   0x6   :  { %v3303_v32 = vpack.c.bf16 %v49_v31, %v48_v30  ;;  %2904 = vmatpush3.bf16.msra.mxu1 %v3292_v28  ;;  %v3316_v36 = vpack.c.bf16 %v51_v34, %v50_v33  ;;  %v2452_v44 = vld [vmem:[%s3686_s1 + $0x8] sm:$0xff]  ;;  %v3352_v45 = vld [vmem:[%s3689_s5] ss:$0 sm:$0xff]  ;;  %v2458_v30 = vld [vmem:[%s3686_s1 + $0x10] sm:$0xff] }
   0x7   :  { %2905 = vmatprep.subr.bf16.mxu1 %v3183_v0 }
   0x8   :  { %2901 = vmatpush3.bf16.msra.mxu0 %v3266_v7  ;;  %v59_v8 = vld [vmem:[#allocation2] sm:$0xff] }
   0x9   :  { %2908 = vmatprep.subr.bf16.mxu0 %v3183_v0  ;;  %v63_v14 = vld [vmem:[#allocation2 + $0x10] sm:$0xff]  ;;  %v61_v37 = vld [vmem:[#allocation2 + $0x8] sm:$0xff] }
   0xa   :  { %2907 = vmatpush3.bf16.msra.mxu1 %v3312_v35  ;;  %v65_v55 = vld [vmem:[#allocation2 + $0x18] sm:$0xff] }
   0xb   :  { %2630 = vmatmul.mubr.msk.f32.vlgmr.msra.gmra.mrb[0].mxu0 %vm33_vm0, %v59_v8  ;;  %2914 = vmatprep.subr.bf16.mxu1 %v3183_v0 }
   0xc   :  { %2651 = vmatprep.mubr.msk.f32.mxu0 %vm3184_vm1, %v3185_v4  ;;  %2910 = vmatpush3.bf16.msra.mxu0 %v3303_v32 }
   0xd   :  { %2911 = vmatprep.subr.bf16.mxu0 %v3183_v0  ;;  %2641 = vmatmul.mubr.msk.f32.vlgmr.msra.gmra.mrb[0].mxu1 %vm33_vm0, %v61_v37 }
   0xe   :  { %2916 = vmatpush3.bf16.msra.mxu1 %v3257_v5  ;;  %2662 = vmatprep.mubr.msk.f32.mxu1 %vm3184_vm1, %v3185_v4 }
   0xf   :  { %2917 = vmatprep.subr.bf16.mxu1 %v3183_v0 }
  0x10   :  { %2913 = vmatpush3.bf16.msra.mxu0 %v3316_v36 }
  0x11   :  { %2920 = vmatprep.subr.bf16.mxu0 %v3183_v0 }
  0x12   :  { %2919 = vmatpush3.bf16.msra.mxu1 %v3266_v7 }
  0x13   :  { %2926 = vmatprep.subr.bf16.mxu1 %v3183_v0 }
  0xde   :  { %v139_v10 = vpop.f32.mrb[0].mxu0 }
  0xdf   :  { %v143_v11 = vadd.f32 %v139_v10, %v68_v9  ;;  %v2631_v12 = vpop.f32.mrb[1].mxu0 }
  0xe0   :  { %v241_v41 = vpop.f32.mrb[0].mxu1 }
  0xe1   :  { %3055 = vtanh.f32 %v143_v11  ;;  %v2448_v15 = vmul.f32 -1.442695, %v143_v11  ;;  %v2642_v42 = vpop.f32.mrb[1].mxu1 }
  0xe3   :  { %3057 = vpow2.f32 %v2448_v15 }
  0xeb   :  { %v3056_v13 = vpop.eup %3055 }
  0xec   :  { %157 = vrot.lane.b32.xlu0 %v3056_v13, %s3186_s14 }
  0xed   :  { %v3058_v16 = vpop.eup %3057 }
  0xee   :  { %v147_v17 = vadd.f32 1.0, %v3058_v16 }
  0xf0   :  { %152 = vrot.lane.b32.xlu0 %v63_v14, %s3187_s15  ;;  %3059 = vrcp.f32 %v147_v17 }
  0xfa   :  { %v3060_v18 = vpop.eup %3059 }
 0x15e   :  { %v158_v19 = vpop.permute.xlu0 %157 }
 0x15f   :  { %v160_v20 = vmul.f32 %v3060_v18, %v158_v19 }
 0x161   :  { %162 = vrot.lane.b32.xlu1 %v160_v20, %s3187_s15 }
 0x162   :  { %v153_v21 = vpop.permute.xlu0 %152 }
 0x163   :  { %v155_v22 = vmul.f32 %v3060_v18, %v153_v21 }
 0x1d3   :  { %v163_v23 = vpop.permute.xlu1 %162 }
 0x1d4   :  { %v3280_v24 = vadd.f32 %v163_v23, %v155_v22 }
 0x1d6   :  { %3061 = vtanh.f32 %v3280_v24 }
 0x1e0   :  { %v3062_v38 = vpop.eup %3061 }
 0x1e1   :  { %168 = vrot.lane.b32.xlu1 %v3062_v38, %s3186_s14 }
 0x253   :  { %v169_v39 = vpop.permute.xlu1 %168 }
 0x254   :  { %v171_v40 = vmul.f32 %v3060_v18, %v169_v39 }
 0x256   :  { %246 = vrot.lane.b32.xlu0 %v171_v40, %s3187_s15 }
 0x2c8   :  { %v247_v43 = vpop.permute.xlu0 %246 }
 0x2c9   :  { %2652 = vmatmul.mubr.msk.f32.vlgmr.msra.gmra.mrb[2].mxu0 %vm33_vm0, %v247_v43  ;;  %2663 = vmatmul.mubr.msk.f32.vlgmr.msra.gmra.mrb[2].mxu1 %vm33_vm0, %v247_v43 }
 0x2ca   :  { %2928 = vmatpush3.bf16.msra.mxu1 %v3303_v32  ;;  %2922 = vmatpush3.bf16.msra.mxu0 %v3292_v28 }
 0x2cb   :  { %2929 = vmatprep.subr.bf16.mxu1 %v3183_v0  ;;  %2923 = vmatprep.subr.bf16.mxu0 %v3183_v0 }
 0x2cc   :  { %2684 = vmatprep.mubr.msk.f32.mxu1 %vm3184_vm1, %v3185_v4  ;;  %2673 = vmatprep.mubr.msk.f32.mxu0 %vm3184_vm1, %v3185_v4 }
 0x2ce   :  { %2931 = vmatpush3.bf16.msra.mxu1 %v3316_v36  ;;  %2925 = vmatpush3.bf16.msra.mxu0 %v3312_v35 }
 0x2cf   :  { %2932 = vmatprep.subr.bf16.mxu0 %v3183_v0  ;;  %2938 = vmatprep.subr.bf16.mxu1 %v3183_v0 }
 0x39c   :  { %v316_v46 = vpop.f32.mrb[2].mxu0  ;;  %v430_v47 = vpop.f32.mrb[2].mxu1 }
 0x39d   :  { %v317_v48 = vadd.f32 %v316_v46, %v241_v41  ;;  %v434_v49 = vadd.f32 %v2452_v44, %v430_v47  ;;  %v2653_v50 = vpop.f32.mrb[3].mxu0  ;;  %v2664_v51 = vpop.f32.mrb[3].mxu1 }
 0x39f   :  { %v320_v52 = vadd.f32 %v3352_v45, %v317_v48  ;;  %3063 = vtanh.f32 %v434_v49  ;;  %v2454_v56 = vmul.f32 -1.442695, %v434_v49 }
 0x3a1   :  { %3065 = vtanh.f32 %v320_v52  ;;  %v2451_v57 = vmul.f32 -1.442695, %v320_v52 }
 0x3a2   :  { %3067 = vpow2.f32 %v2454_v56 }
 0x3a3   :  { %3069 = vpow2.f32 %v2451_v57 }
 0x3a9   :  { %v3064_v53 = vpop.eup %3063 }
 0x3aa   :  { %444 = vrot.lane.b32.xlu0 %v3064_v53, %s3186_s14 }
 0x3ab   :  { %v3066_v54 = vpop.eup %3065 }
 0x3ac   :  { %334 = vrot.lane.b32.xlu1 %v3066_v54, %s3186_s14  ;;  %v3068_v58 = vpop.eup %3067 }
 0x3ad   :  { %v3070_v59 = vpop.eup %3069  ;;  %v438_v60 = vadd.f32 1.0, %v3068_v58 }
 0x3ae   :  { %v324_v61 = vadd.f32 1.0, %v3070_v59 }
 0x3af   :  { %3071 = vrcp.f32 %v438_v60 }
 0x3b0   :  { %329 = vrot.lane.b32.xlu1 %v65_v55, %s3187_s15  ;;  %3073 = vrcp.f32 %v324_v61 }
 0x3b9   :  { %v3072_v62 = vpop.eup %3071 }
 0x3ba   :  { %v3074_v2 = vpop.eup %3073  ;;  %v442_v9 = vmul.f32 %v3072_v62, %v3280_v24 }
 0x41c   :  { %v445_v63 = vpop.permute.xlu0 %444 }
 0x41d   :  { %v447_v1 = vmul.f32 %v3072_v62, %v445_v63 }
 0x41e   :  { %v335_v3 = vpop.permute.xlu1 %334 }
 0x41f   :  { %v337_v6 = vmul.f32 %v3074_v2, %v335_v3  ;;  %449 = vrot.lane.b32.xlu1 %v447_v1, %s3187_s15 }
 0x421   :  { %339 = vrot.lane.b32.xlu0 %v337_v6, %s3187_s15 }
 0x422   :  { %v330_v8 = vpop.permute.xlu1 %329 }
 0x423   :  { %v332_v11 = vmul.f32 %v3074_v2, %v330_v8 }
 0x491   :  { %v450_v10 = vpop.permute.xlu1 %449 }
 0x492   :  { %v3361_v12 = vadd.f32 %v450_v10, %v442_v9  ;;  %v2464_v9 = vld [vmem:[%s3686_s1 + $0x18] sm:$0xff] }
 0x493   :  { %v340_v13 = vpop.permute.xlu0 %339 }
 0x494   :  { %3075 = vtanh.f32 %v3361_v12  ;;  %v3364_v14 = vadd.f32 %v340_v13, %v332_v11 }
 0x496   :  { %3077 = vtanh.f32 %v3364_v14 }
 0x49e   :  { %v3076_v15 = vpop.eup %3075 }
 0x49f   :  { %455 = vrot.lane.b32.xlu1 %v3076_v15, %s3186_s14 }
 0x4a0   :  { %v3078_v16 = vpop.eup %3077 }
 0x4a1   :  { %345 = vrot.lane.b32.xlu0 %v3078_v16, %s3186_s14 }
 0x511   :  { %v456_v17 = vpop.permute.xlu1 %455 }
 0x512   :  { %v458_v18 = vmul.f32 %v3072_v62, %v456_v17 }
 0x513   :  { %v346_v19 = vpop.permute.xlu0 %345 }
 0x514   :  { %v3369_v20 = vmul.f32 %v3074_v2, %v346_v19  ;;  %535 = vrot.lane.b32.xlu1 %v458_v18, %s3187_s15 }
 0x516   :  { %460 = vrot.lane.b32.xlu0 %v3369_v20, %s3187_s15 }
 0x586   :  { %v536_v21 = vpop.permute.xlu1 %535 }
 0x587   :  { %2685 = vmatmul.mubr.msk.f32.vlgmr.msra.gmra.mrb[4].mxu1 %vm33_vm0, %v536_v21 }
 0x588   :  { %v461_v22 = vpop.permute.xlu0 %460  ;;  %2940 = vmatpush3.bf16.msra.mxu1 %v3292_v28  ;;  %2706 = vmatprep.mubr.msk.f32.mxu1 %vm3184_vm1, %v3185_v4 }
 0x589   :  { %2674 = vmatmul.mubr.msk.f32.vlgmr.msra.gmra.mrb[4].mxu0 %vm33_vm0, %v461_v22  ;;  %2941 = vmatprep.subr.bf16.mxu1 %v3183_v0 }
 0x58a   :  { %2934 = vmatpush3.bf16.msra.mxu0 %v3257_v5  ;;  %2695 = vmatprep.mubr.msk.f32.mxu0 %vm3184_vm1, %v3185_v4 }
 0x58b   :  { %2935 = vmatprep.subr.bf16.mxu0 %v3183_v0 }
 0x58c   :  { %2943 = vmatpush3.bf16.msra.mxu1 %v3312_v35 }
 0x58d   :  { %2950 = vmatprep.subr.bf16.mxu1 %v3183_v0 }
 0x58e   :  { %2937 = vmatpush3.bf16.msra.mxu0 %v3266_v7 }
 0x58f   :  { %2944 = vmatprep.subr.bf16.mxu0 %v3183_v0 }
 0x591   :  { %2696 = vmatmul.mubr.msk.f32.vlgmr.msra.gmra.mrb[6].mxu0 %vm33_vm0, %v536_v21 }
 0x592   :  { %2946 = vmatpush3.bf16.msra.mxu0 %v3303_v32  ;;  %2717 = vmatprep.mubr.msk.f32.mxu0 %vm3184_vm1, %v3185_v4 }
 0x593   :  { %2947 = vmatprep.subr.bf16.mxu0 %v3183_v0 }
 0x596   :  { %2949 = vmatpush3.bf16.msra.mxu0 %v3316_v36 }
 0x597   :  { %2956 = vmatprep.subr.bf16.mxu0 %v3183_v0 }
 0x65a   :  { %v605_v23 = vpop.f32.mrb[4].mxu1 }
 0x65b   :  { %v2686_v24 = vpop.f32.mrb[5].mxu1 }
 0x65c   :  { %v530_v25 = vpop.f32.mrb[4].mxu0 }
 0x65d   :  { %v606_v26 = vadd.f32 %v605_v23, %v530_v25  ;;  %v2675_v27 = vpop.f32.mrb[5].mxu0 }
 0x65f   :  { %v609_v29 = vadd.f32 %v3352_v45, %v606_v26 }
 0x661   :  { %3079 = vtanh.f32 %v609_v29  ;;  %v2457_v39 = vmul.f32 -1.442695, %v609_v29 }
 0x664   :  { %v711_v31 = vpop.f32.mrb[6].mxu0 }
 0x665   :  { %v715_v33 = vadd.f32 %v2458_v30, %v711_v31  ;;  %v2697_v34 = vpop.f32.mrb[7].mxu0 }
 0x667   :  { %3081 = vtanh.f32 %v715_v33  ;;  %v2460_v40 = vmul.f32 -1.442695, %v715_v33 }
 0x668   :  { %3083 = vpow2.f32 %v2457_v39 }
 0x669   :  { %3085 = vpow2.f32 %v2460_v40 }
 0x66b   :  { %v3080_v37 = vpop.eup %3079 }
 0x66c   :  { %619 = vrot.lane.b32.xlu0 %v3080_v37, %s3186_s14 }
 0x671   :  { %v3082_v38 = vpop.eup %3081 }
 0x672   :  { %725 = vrot.lane.b32.xlu1 %v3082_v38, %s3186_s14  ;;  %v3084_v41 = vpop.eup %3083 }
 0x673   :  { %v613_v42 = vadd.f32 1.0, %v3084_v41  ;;  %v3086_v43 = vpop.eup %3085 }
 0x674   :  { %v719_v44 = vadd.f32 1.0, %v3086_v43 }
 0x675   :  { %3087 = vrcp.f32 %v613_v42 }
 0x676   :  { %3089 = vrcp.f32 %v719_v44 }
 0x67f   :  { %v3088_v46 = vpop.eup %3087 }
 0x680   :  { %v3090_v49 = vpop.eup %3089  ;;  %v617_v52 = vmul.f32 %v3088_v46, %v3364_v14 }
 0x681   :  { %v723_v55 = vmul.f32 %v3090_v49, %v3361_v12 }
 0x6de   :  { %v620_v47 = vpop.permute.xlu0 %619 }
 0x6df   :  { %v622_v48 = vmul.f32 %v3088_v46, %v620_v47 }
 0x6e1   :  { %624 = vrot.lane.b32.xlu0 %v622_v48, %s3187_s15 }
 0x6e4   :  { %v726_v50 = vpop.permute.xlu1 %725 }
 0x6e5   :  { %v728_v51 = vmul.f32 %v3090_v49, %v726_v50 }
 0x6e7   :  { %730 = vrot.lane.b32.xlu1 %v728_v51, %s3187_s15 }
 0x753   :  { %v625_v53 = vpop.permute.xlu0 %624 }
 0x754   :  { %v3404_v54 = vadd.f32 %v625_v53, %v617_v52 }
 0x756   :  { %3091 = vtanh.f32 %v3404_v54 }
 0x759   :  { %v731_v56 = vpop.permute.xlu1 %730 }
 0x75a   :  { %v3408_v57 = vadd.f32 %v731_v56, %v723_v55  ;;  %v2470_v56 = vld [vmem:[%s3686_s1 + $0x20] sm:$0xff] }
 0x75c   :  { %3093 = vtanh.f32 %v3408_v57 }
 0x760   :  { %v3092_v58 = vpop.eup %3091 }
 0x761   :  { %630 = vrot.lane.b32.xlu0 %v3092_v58, %s3186_s14 }
 0x766   :  { %v3094_v59 = vpop.eup %3093 }
 0x767   :  { %736 = vrot.lane.b32.xlu1 %v3094_v59, %s3186_s14 }
 0x7d3   :  { %v631_v60 = vpop.permute.xlu0 %630 }
 0x7d4   :  { %v3413_v61 = vmul.f32 %v3088_v46, %v631_v60 }
 0x7d6   :  { %741 = vrot.lane.b32.xlu0 %v3413_v61, %s3187_s15 }
 0x7d9   :  { %v737_v62 = vpop.permute.xlu1 %736 }
 0x7da   :  { %v739_v63 = vmul.f32 %v3090_v49, %v737_v62 }
 0x7dc   :  { %816 = vrot.lane.b32.xlu1 %v739_v63, %s3187_s15 }
 0x848   :  { %v742_v1 = vpop.permute.xlu0 %741 }
 0x849   :  { %2707 = vmatmul.mubr.msk.f32.vlgmr.msra.gmra.mrb[6].mxu1 %vm33_vm0, %v742_v1 }
 0x84a   :  { %2952 = vmatpush3.bf16.msra.mxu1 %v3257_v5  ;;  %2728 = vmatprep.mubr.msk.f32.mxu1 %vm3184_vm1, %v3185_v4 }
 0x84b   :  { %2953 = vmatprep.subr.bf16.mxu1 %v3183_v0 }
 0x84e   :  { %2955 = vmatpush3.bf16.msra.mxu1 %v3266_v7  ;;  %v817_v2 = vpop.permute.xlu1 %816 }
 0x84f   :  { %2718 = vmatmul.mubr.msk.f32.vlgmr.msra.gmra.mrb[8].mxu0 %vm33_vm0, %v817_v2  ;;  %2962 = vmatprep.subr.bf16.mxu1 %v3183_v0 }
 0x850   :  { %2958 = vmatpush3.bf16.msra.mxu0 %v3292_v28  ;;  %2739 = vmatprep.mubr.msk.f32.mxu0 %vm3184_vm1, %v3185_v4 }
 0x851   :  { %2729 = vmatmul.mubr.msk.f32.vlgmr.msra.gmra.mrb[8].mxu1 %vm33_vm0, %v817_v2  ;;  %2959 = vmatprep.subr.bf16.mxu0 %v3183_v0 }
 0x852   :  { %2964 = vmatpush3.bf16.msra.mxu1 %v3303_v32  ;;  %2750 = vmatprep.mubr.msk.f32.mxu1 %vm3184_vm1, %v3185_v4 }
 0x853   :  { %2965 = vmatprep.subr.bf16.mxu1 %v3183_v0 }
 0x854   :  { %2961 = vmatpush3.bf16.msra.mxu0 %v3312_v35 }
 0x855   :  { %2968 = vmatprep.subr.bf16.mxu0 %v3183_v0 }
 0x856   :  { %2967 = vmatpush3.bf16.msra.mxu1 %v3316_v36 }
 0x857   :  { %2974 = vmatprep.subr.bf16.mxu1 %v3183_v0 }
 0x91c   :  { %v811_v3 = vpop.f32.mrb[6].mxu1 }
 0x91d   :  { %v2708_v6 = vpop.f32.mrb[7].mxu1 }
 0x922   :  { %v886_v8 = vpop.f32.mrb[8].mxu0 }
 0x923   :  { %v887_v10 = vadd.f32 %v886_v8, %v811_v3  ;;  %v2719_v11 = vpop.f32.mrb[9].mxu0 }
 0x924   :  { %v992_v12 = vpop.f32.mrb[8].mxu1 }
 0x925   :  { %v890_v13 = vadd.f32 %v3352_v45, %v887_v10  ;;  %v996_v14 = vadd.f32 %v2464_v9, %v992_v12  ;;  %v2730_v15 = vpop.f32.mrb[9].mxu1 }
 0x927   :  { %3095 = vtanh.f32 %v890_v13  ;;  %v2463_v18 = vmul.f32 -1.442695, %v890_v13  ;;  %v2466_v19 = vmul.f32 -1.442695, %v996_v14 }
 0x928   :  { %3097 = vtanh.f32 %v996_v14 }
 0x929   :  { %3099 = vpow2.f32 %v2463_v18 }
 0x92a   :  { %3101 = vpow2.f32 %v2466_v19 }
 0x931   :  { %v3096_v16 = vpop.eup %3095 }
 0x932   :  { %v3098_v17 = vpop.eup %3097  ;;  %900 = vrot.lane.b32.xlu0 %v3096_v16, %s3186_s14 }
 0x933   :  { %1006 = vrot.lane.b32.xlu1 %v3098_v17, %s3186_s14  ;;  %v3100_v21 = vpop.eup %3099 }
 0x934   :  { %v3102_v22 = vpop.eup %3101  ;;  %v894_v23 = vadd.f32 1.0, %v3100_v21 }
 0x935   :  { %v1000_v24 = vadd.f32 1.0, %v3102_v22 }
 0x936   :  { %3103 = vrcp.f32 %v894_v23 }
 0x937   :  { %3105 = vrcp.f32 %v1000_v24 }
 0x940   :  { %v3104_v25 = vpop.eup %3103 }
 0x941   :  { %v3106_v27 = vpop.eup %3105  ;;  %v898_v33 = vmul.f32 %v3104_v25, %v3404_v54 }
 0x942   :  { %v1004_v34 = vmul.f32 %v3106_v27, %v3408_v57 }
 0x9a4   :  { %v901_v26 = vpop.permute.xlu0 %900 }
 0x9a5   :  { %v1007_v29 = vpop.permute.xlu1 %1006  ;;  %v903_v30 = vmul.f32 %v3104_v25, %v901_v26 }
 0x9a6   :  { %v1009_v31 = vmul.f32 %v3106_v27, %v1007_v29 }
 0x9a7   :  { %905 = vrot.lane.b32.xlu0 %v903_v30, %s3187_s15 }
 0x9a8   :  { %1011 = vrot.lane.b32.xlu1 %v1009_v31, %s3187_s15 }
 0xa19   :  { %v906_v37 = vpop.permute.xlu0 %905 }
 0xa1a   :  { %v1012_v38 = vpop.permute.xlu1 %1011  ;;  %v3449_v39 = vadd.f32 %v906_v37, %v898_v33 }
 0xa1b   :  { %v3451_v40 = vadd.f32 %v1012_v38, %v1004_v34 }
 0xa1c   :  { %3107 = vtanh.f32 %v3449_v39 }
 0xa1d   :  { %3109 = vtanh.f32 %v3451_v40 }
 0xa26   :  { %v3108_v41 = vpop.eup %3107 }
 0xa27   :  { %v3110_v42 = vpop.eup %3109  ;;  %911 = vrot.lane.b32.xlu0 %v3108_v41, %s3186_s14 }
 0xa28   :  { %1017 = vrot.lane.b32.xlu1 %v3110_v42, %s3186_s14 }
 0xa99   :  { %v912_v43 = vpop.permute.xlu0 %911 }
 0xa9a   :  { %v1018_v44 = vpop.permute.xlu1 %1017  ;;  %v3457_v46 = vmul.f32 %v3104_v25, %v912_v43 }
 0xa9b   :  { %v1020_v47 = vmul.f32 %v3106_v27, %v1018_v44 }
 0xa9c   :  { %1022 = vrot.lane.b32.xlu0 %v3457_v46, %s3187_s15 }
 0xa9d   :  { %1097 = vrot.lane.b32.xlu1 %v1020_v47, %s3187_s15 }
 0xb0e   :  { %v1023_v48 = vpop.permute.xlu0 %1022 }
 0xb0f   :  { %v1098_v49 = vpop.permute.xlu1 %1097  ;;  %2740 = vmatmul.mubr.msk.f32.vlgmr.msra.gmra.mrb[10].mxu0 %vm33_vm0, %v1023_v48 }
 0xb10   :  { %2751 = vmatmul.mubr.msk.f32.vlgmr.msra.gmra.mrb[10].mxu1 %vm33_vm0, %v1098_v49  ;;  %2970 = vmatpush3.bf16.msra.mxu0 %v3257_v5 }
 0xb11   :  { %2971 = vmatprep.subr.bf16.mxu0 %v3183_v0  ;;  %2761 = vmatprep.mubr.msk.f32.mxu0 %vm3184_vm1, %v3185_v4 }
 0xb12   :  { %2976 = vmatpush3.bf16.msra.mxu1 %v3292_v28  ;;  %2772 = vmatprep.mubr.msk.f32.mxu1 %vm3184_vm1, %v3185_v4 }
 0xb13   :  { %2977 = vmatprep.subr.bf16.mxu1 %v3183_v0 }
 0xb14   :  { %2973 = vmatpush3.bf16.msra.mxu0 %v3266_v7 }
 0xb15   :  { %2980 = vmatprep.subr.bf16.mxu0 %v3183_v0 }
 0xb16   :  { %2979 = vmatpush3.bf16.msra.mxu1 %v3312_v35 }
 0xb17   :  { %2762 = vmatmul.mubr.msk.f32.vlgmr.msra.gmra.mrb[12].mxu0 %vm33_vm0, %v1098_v49  ;;  %2986 = vmatprep.subr.bf16.mxu1 %v3183_v0 }
 0xb18   :  { %2982 = vmatpush3.bf16.msra.mxu0 %v3303_v32  ;;  %2783 = vmatprep.mubr.msk.f32.mxu0 %vm3184_vm1, %v3185_v4 }
 0xb19   :  { %2983 = vmatprep.subr.bf16.mxu0 %v3183_v0 }
 0xb1c   :  { %2985 = vmatpush3.bf16.msra.mxu0 %v3316_v36 }
 0xb1d   :  { %2992 = vmatprep.subr.bf16.mxu0 %v3183_v0 }
 0xbe2   :  { %v1092_v50 = vpop.f32.mrb[10].mxu0 }
 0xbe3   :  { %v1167_v51 = vpop.f32.mrb[10].mxu1  ;;  %v2741_v52 = vpop.f32.mrb[11].mxu0 }
 0xbe4   :  { %v1168_v53 = vadd.f32 %v1167_v51, %v1092_v50  ;;  %v2752_v54 = vpop.f32.mrb[11].mxu1 }
 0xbe6   :  { %v1171_v55 = vadd.f32 %v3352_v45, %v1168_v53 }
 0xbe8   :  { %3111 = vtanh.f32 %v1171_v55  ;;  %v2469_v63 = vmul.f32 -1.442695, %v1171_v55 }
 0xbea   :  { %v1273_v57 = vpop.f32.mrb[12].mxu0 }
 0xbeb   :  { %v1277_v58 = vadd.f32 %v2470_v56, %v1273_v57  ;;  %v2763_v59 = vpop.f32.mrb[13].mxu0 }
 0xbed   :  { %3113 = vtanh.f32 %v1277_v58  ;;  %v2472_v1 = vmul.f32 -1.442695, %v1277_v58 }
 0xbee   :  { %3115 = vpow2.f32 %v2469_v63 }
 0xbef   :  { %3117 = vpow2.f32 %v2472_v1 }
 0xbf2   :  { %v3112_v60 = vpop.eup %3111 }
 0xbf3   :  { %1181 = vrot.lane.b32.xlu0 %v3112_v60, %s3186_s14 }
 0xbf7   :  { %v3114_v62 = vpop.eup %3113 }
 0xbf8   :  { %1287 = vrot.lane.b32.xlu1 %v3114_v62, %s3186_s14  ;;  %v3116_v2 = vpop.eup %3115 }
 0xbf9   :  { %v1175_v3 = vadd.f32 1.0, %v3116_v2  ;;  %v3118_v6 = vpop.eup %3117 }
 0xbfa   :  { %v1281_v8 = vadd.f32 1.0, %v3118_v6 }
 0xbfb   :  { %3119 = vrcp.f32 %v1175_v3 }
 0xbfc   :  { %3121 = vrcp.f32 %v1281_v8 }
 0xc05   :  { %v3120_v9 = vpop.eup %3119 }
 0xc06   :  { %v3122_v12 = vpop.eup %3121  ;;  %v1179_v15 = vmul.f32 %v3120_v9, %v3449_v39  ;;  %v2476_v39 = vld [vmem:[%s3686_s1 + $0x28] sm:$0xff] }
 0xc07   :  { %v1285_v18 = vmul.f32 %v3122_v12, %v3451_v40 }
 0xc65   :  { %v1182_v10 = vpop.permute.xlu0 %1181 }
 0xc66   :  { %v1184_v11 = vmul.f32 %v3120_v9, %v1182_v10 }
 0xc68   :  { %1186 = vrot.lane.b32.xlu0 %v1184_v11, %s3187_s15 }
 0xc6a   :  { %v1288_v13 = vpop.permute.xlu1 %1287 }
 0xc6b   :  { %v1290_v14 = vmul.f32 %v3122_v12, %v1288_v13 }
 0xc6d   :  { %1292 = vrot.lane.b32.xlu1 %v1290_v14, %s3187_s15 }
 0xcda   :  { %v1187_v16 = vpop.permute.xlu0 %1186 }
 0xcdb   :  { %v3492_v17 = vadd.f32 %v1187_v16, %v1179_v15 }
 0xcdd   :  { %3123 = vtanh.f32 %v3492_v17 }
 0xcdf   :  { %v1293_v19 = vpop.permute.xlu1 %1292 }
 0xce0   :  { %v3496_v21 = vadd.f32 %v1293_v19, %v1285_v18 }
 0xce2   :  { %3125 = vtanh.f32 %v3496_v21 }
 0xce7   :  { %v3124_v22 = vpop.eup %3123 }
 0xce8   :  { %1192 = vrot.lane.b32.xlu0 %v3124_v22, %s3186_s14  ;;  %v2482_v22 = vld [vmem:[%s3686_s1 + $0x30] sm:$0xff] }
 0xcec   :  { %v3126_v23 = vpop.eup %3125 }
 0xced   :  { %1298 = vrot.lane.b32.xlu1 %v3126_v23, %s3186_s14 }
 0xd5a   :  { %v1193_v24 = vpop.permute.xlu0 %1192 }
 0xd5b   :  { %v3501_v25 = vmul.f32 %v3120_v9, %v1193_v24 }
 0xd5d   :  { %1303 = vrot.lane.b32.xlu0 %v3501_v25, %s3187_s15 }
 0xd5f   :  { %v1299_v26 = vpop.permute.xlu1 %1298 }
 0xd60   :  { %v1301_v27 = vmul.f32 %v3122_v12, %v1299_v26 }
 0xd62   :  { %1378 = vrot.lane.b32.xlu1 %v1301_v27, %s3187_s15 }
 0xdcf   :  { %v1304_v29 = vpop.permute.xlu0 %1303 }
 0xdd0   :  { %2773 = vmatmul.mubr.msk.f32.vlgmr.msra.gmra.mrb[12].mxu1 %vm33_vm0, %v1304_v29 }
 0xdd1   :  { %2988 = vmatpush3.bf16.msra.mxu1 %v3257_v5  ;;  %2794 = vmatprep.mubr.msk.f32.mxu1 %vm3184_vm1, %v3185_v4 }
 0xdd2   :  { %2989 = vmatprep.subr.bf16.mxu1 %v3183_v0 }
 0xdd4   :  { %v1379_v30 = vpop.permute.xlu1 %1378 }
 0xdd5   :  { %2991 = vmatpush3.bf16.msra.mxu1 %v3266_v7  ;;  %2784 = vmatmul.mubr.msk.f32.vlgmr.msra.gmra.mrb[14].mxu0 %vm33_vm0, %v1379_v30 }
 0xdd6   :  { %2994 = vmatpush3.bf16.msra.mxu0 %v3292_v28  ;;  %2998 = vmatprep.subr.bf16.mxu1 %v3183_v0 }
 0xdd7   :  { %2995 = vmatprep.subr.bf16.mxu0 %v3183_v0  ;;  %2805 = vmatprep.mubr.msk.f32.mxu0 %vm3184_vm1, %v3185_v4 }
 0xdd8   :  { %2795 = vmatmul.mubr.msk.f32.vlgmr.msra.gmra.mrb[14].mxu1 %vm33_vm0, %v1379_v30 }
 0xdd9   :  { %3000 = vmatpush3.bf16.msra.mxu1 %v3303_v32  ;;  %2816 = vmatprep.mubr.msk.f32.mxu1 %vm3184_vm1, %v3185_v4 }
 0xdda   :  { %2997 = vmatpush3.bf16.msra.mxu0 %v3312_v35  ;;  %3001 = vmatprep.subr.bf16.mxu1 %v3183_v0 }
 0xddb   :  { %3004 = vmatprep.subr.bf16.mxu0 %v3183_v0 }
 0xddd   :  { %3003 = vmatpush3.bf16.msra.mxu1 %v3316_v36 }
 0xdde   :  { %3010 = vmatprep.subr.bf16.mxu1 %v3183_v0 }
 0xea3   :  { %v1373_v31 = vpop.f32.mrb[12].mxu1 }
 0xea4   :  { %v2774_v33 = vpop.f32.mrb[13].mxu1 }
 0xea8   :  { %v1448_v34 = vpop.f32.mrb[14].mxu0 }
 0xea9   :  { %v1449_v37 = vadd.f32 %v1448_v34, %v1373_v31  ;;  %v2785_v38 = vpop.f32.mrb[15].mxu0 }
 0xeab   :  { %v1452_v40 = vadd.f32 %v3352_v45, %v1449_v37  ;;  %v1554_v41 = vpop.f32.mrb[14].mxu1 }
 0xeac   :  { %v1558_v42 = vadd.f32 %v2476_v39, %v1554_v41  ;;  %v2796_v43 = vpop.f32.mrb[15].mxu1 }
 0xead   :  { %3127 = vtanh.f32 %v1452_v40  ;;  %v2475_v48 = vmul.f32 -1.442695, %v1452_v40 }
 0xeae   :  { %3129 = vtanh.f32 %v1558_v42  ;;  %v2478_v49 = vmul.f32 -1.442695, %v1558_v42 }
 0xeaf   :  { %3131 = vpow2.f32 %v2475_v48 }
 0xeb0   :  { %3133 = vpow2.f32 %v2478_v49 }
 0xeb7   :  { %v3128_v44 = vpop.eup %3127 }
 0xeb8   :  { %v3130_v47 = vpop.eup %3129  ;;  %1462 = vrot.lane.b32.xlu0 %v3128_v44, %s3186_s14 }
 0xeb9   :  { %1568 = vrot.lane.b32.xlu1 %v3130_v47, %s3186_s14  ;;  %v3132_v50 = vpop.eup %3131 }
 0xeba   :  { %v3134_v51 = vpop.eup %3133  ;;  %v1456_v52 = vadd.f32 1.0, %v3132_v50 }
 0xebb   :  { %v1562_v53 = vadd.f32 1.0, %v3134_v51 }
 0xebc   :  { %3135 = vrcp.f32 %v1456_v52 }
 0xebd   :  { %3137 = vrcp.f32 %v1562_v53 }
 0xec6   :  { %v3136_v54 = vpop.eup %3135 }
 0xec7   :  { %v3138_v56 = vpop.eup %3137  ;;  %v1460_v60 = vmul.f32 %v3136_v54, %v3492_v17 }
 0xec8   :  { %v1566_v62 = vmul.f32 %v3138_v56, %v3496_v21 }
 0xf2a   :  { %v1463_v55 = vpop.permute.xlu0 %1462 }
 0xf2b   :  { %v1569_v57 = vpop.permute.xlu1 %1568  ;;  %v1465_v58 = vmul.f32 %v3136_v54, %v1463_v55 }
 0xf2c   :  { %v1571_v59 = vmul.f32 %v3138_v56, %v1569_v57 }
 0xf2d   :  { %1467 = vrot.lane.b32.xlu0 %v1465_v58, %s3187_s15 }
 0xf2e   :  { %1573 = vrot.lane.b32.xlu1 %v1571_v59, %s3187_s15 }
 0xf9f   :  { %v1468_v63 = vpop.permute.xlu0 %1467 }
 0xfa0   :  { %v1574_v1 = vpop.permute.xlu1 %1573  ;;  %v3537_v2 = vadd.f32 %v1468_v63, %v1460_v60 }
 0xfa1   :  { %v3539_v3 = vadd.f32 %v1574_v1, %v1566_v62 }
 0xfa2   :  { %3139 = vtanh.f32 %v3537_v2 }
 0xfa3   :  { %3141 = vtanh.f32 %v3539_v3 }
 0xfac   :  { %v3140_v6 = vpop.eup %3139 }
 0xfad   :  { %v3142_v8 = vpop.eup %3141  ;;  %1473 = vrot.lane.b32.xlu0 %v3140_v6, %s3186_s14 }
 0xfae   :  { %1579 = vrot.lane.b32.xlu1 %v3142_v8, %s3186_s14 }
0x101f   :  { %v1474_v9 = vpop.permute.xlu0 %1473 }
0x1020   :  { %v1580_v10 = vpop.permute.xlu1 %1579  ;;  %v3545_v11 = vmul.f32 %v3136_v54, %v1474_v9 }
0x1021   :  { %v1582_v12 = vmul.f32 %v3138_v56, %v1580_v10 }
0x1022   :  { %1584 = vrot.lane.b32.xlu0 %v3545_v11, %s3187_s15 }
0x1023   :  { %1659 = vrot.lane.b32.xlu1 %v1582_v12, %s3187_s15 }
0x1094   :  { %v1585_v13 = vpop.permute.xlu0 %1584 }
0x1095   :  { %v1660_v14 = vpop.permute.xlu1 %1659  ;;  %2806 = vmatmul.mubr.msk.f32.vlgmr.msra.gmra.mrb[16].mxu0 %vm33_vm0, %v1585_v13 }
0x1096   :  { %2817 = vmatmul.mubr.msk.f32.vlgmr.msra.gmra.mrb[16].mxu1 %vm33_vm0, %v1660_v14  ;;  %3006 = vmatpush3.bf16.msra.mxu0 %v3257_v5 }
0x1097   :  { %3007 = vmatprep.subr.bf16.mxu0 %v3183_v0  ;;  %2827 = vmatprep.mubr.msk.f32.mxu0 %vm3184_vm1, %v3185_v4 }
0x1098   :  { %3012 = vmatpush3.bf16.msra.mxu1 %v3292_v28  ;;  %2838 = vmatprep.mubr.msk.f32.mxu1 %vm3184_vm1, %v3185_v4 }
0x1099   :  { %3013 = vmatprep.subr.bf16.mxu1 %v3183_v0 }
0x109a   :  { %3009 = vmatpush3.bf16.msra.mxu0 %v3266_v7 }
0x109b   :  { %3016 = vmatprep.subr.bf16.mxu0 %v3183_v0 }
0x109c   :  { %3015 = vmatpush3.bf16.msra.mxu1 %v3312_v35 }
0x109d   :  { %2828 = vmatmul.mubr.msk.f32.vlgmr.msra.gmra.mrb[18].mxu0 %vm33_vm0, %v1660_v14  ;;  %3022 = vmatprep.subr.bf16.mxu1 %v3183_v0 }
0x109e   :  { %3018 = vmatpush3.bf16.msra.mxu0 %v3303_v32  ;;  %2849 = vmatprep.mubr.msk.f32.mxu0 %vm3184_vm1, %v3185_v4 }
0x109f   :  { %3019 = vmatprep.subr.bf16.mxu0 %v3183_v0 }
0x10a2   :  { %3021 = vmatpush3.bf16.msra.mxu0 %v3316_v36 }
0x10a3   :  { %3028 = vmatprep.subr.bf16.mxu0 %v3183_v0 }
0x1168   :  { %v1654_v15 = vpop.f32.mrb[16].mxu0 }
0x1169   :  { %v1729_v16 = vpop.f32.mrb[16].mxu1  ;;  %v2807_v17 = vpop.f32.mrb[17].mxu0 }
0x116a   :  { %v1730_v18 = vadd.f32 %v1729_v16, %v1654_v15  ;;  %v2818_v19 = vpop.f32.mrb[17].mxu1 }
0x116c   :  { %v1733_v21 = vadd.f32 %v3352_v45, %v1730_v18 }
0x116e   :  { %3143 = vtanh.f32 %v1733_v21  ;;  %v2481_v30 = vmul.f32 -1.442695, %v1733_v21 }
0x1170   :  { %v1835_v23 = vpop.f32.mrb[18].mxu0 }
0x1171   :  { %v1839_v24 = vadd.f32 %v2482_v22, %v1835_v23  ;;  %v2829_v26 = vpop.f32.mrb[19].mxu0 }
0x1173   :  { %3145 = vtanh.f32 %v1839_v24  ;;  %v2484_v31 = vmul.f32 -1.442695, %v1839_v24 }
0x1174   :  { %3147 = vpow2.f32 %v2481_v30 }
0x1175   :  { %3149 = vpow2.f32 %v2484_v31 }
0x1178   :  { %v3144_v27 = vpop.eup %3143 }
0x1179   :  { %1743 = vrot.lane.b32.xlu0 %v3144_v27, %s3186_s14 }
0x117d   :  { %v3146_v29 = vpop.eup %3145 }
0x117e   :  { %1849 = vrot.lane.b32.xlu1 %v3146_v29, %s3186_s14  ;;  %v3148_v33 = vpop.eup %3147 }
0x117f   :  { %v1737_v34 = vadd.f32 1.0, %v3148_v33  ;;  %v3150_v37 = vpop.eup %3149 }
0x1180   :  { %v1843_v38 = vadd.f32 1.0, %v3150_v37 }
0x1181   :  { %3151 = vrcp.f32 %v1737_v34 }
0x1182   :  { %3153 = vrcp.f32 %v1843_v38 }
0x118b   :  { %v3152_v39 = vpop.eup %3151 }
0x118c   :  { %v3154_v42 = vpop.eup %3153  ;;  %v1741_v47 = vmul.f32 %v3152_v39, %v3537_v2 }
0x118d   :  { %v1847_v50 = vmul.f32 %v3154_v42, %v3539_v3 }
0x11eb   :  { %v1744_v40 = vpop.permute.xlu0 %1743 }
0x11ec   :  { %v1746_v41 = vmul.f32 %v3152_v39, %v1744_v40 }
0x11ee   :  { %1748 = vrot.lane.b32.xlu0 %v1746_v41, %s3187_s15 }
0x11f0   :  { %v1850_v43 = vpop.permute.xlu1 %1849 }
0x11f1   :  { %v1852_v44 = vmul.f32 %v3154_v42, %v1850_v43 }
0x11f3   :  { %1854 = vrot.lane.b32.xlu1 %v1852_v44, %s3187_s15 }
0x1260   :  { %v1749_v48 = vpop.permute.xlu0 %1748 }
0x1261   :  { %v3580_v49 = vadd.f32 %v1749_v48, %v1741_v47 }
0x1263   :  { %3155 = vtanh.f32 %v3580_v49 }
0x1265   :  { %v1855_v51 = vpop.permute.xlu1 %1854 }
0x1266   :  { %v3584_v52 = vadd.f32 %v1855_v51, %v1847_v50  ;;  %v39_v50 = vld [vmem:[%s3690_s0] sm:$0xff]  ;;  %s3189_s0 = smov 96  }
0x1267   :  { %vm636_vm2 = vcmp.eq.s32.totalorder %v39_v50, 1  ;;  %vm917_vm3 = vcmp.eq.s32.totalorder %v39_v50, 2  ;;  %vm1479_vm4 = vcmp.eq.s32.totalorder %v39_v50, 4  ;;  %vm2041_vm5 = vcmp.eq.s32.totalorder %v39_v50, 6 }
0x1268   :  { %3157 = vtanh.f32 %v3584_v52  ;;  %vm351_vm6 = vcmp.eq.s32.totalorder %v39_v50, 0  ;;  %vm1198_vm7 = vcmp.eq.s32.totalorder %v39_v50, 3  ;;  %vm1760_vm8 = vcmp.eq.s32.totalorder %v39_v50, 5 }
0x1269   :  { %vm2322_vm9 = vcmp.eq.s32.totalorder %v39_v50, 7 }
0x126d   :  { %v3156_v53 = vpop.eup %3155 }
0x126e   :  { %1754 = vrot.lane.b32.xlu0 %v3156_v53, %s3186_s14 }
0x1272   :  { %v3158_v54 = vpop.eup %3157 }
0x1273   :  { %1860 = vrot.lane.b32.xlu1 %v3158_v54, %s3186_s14 }
0x12e0   :  { %v1755_v55 = vpop.permute.xlu0 %1754 }
0x12e1   :  { %v3589_v56 = vmul.f32 %v3152_v39, %v1755_v55 }
0x12e3   :  { %1865 = vrot.lane.b32.xlu0 %v3589_v56, %s3187_s15 }
0x12e5   :  { %v1861_v57 = vpop.permute.xlu1 %1860 }
0x12e6   :  { %v1863_v58 = vmul.f32 %v3154_v42, %v1861_v57 }
0x12e8   :  { %1940 = vrot.lane.b32.xlu1 %v1863_v58, %s3187_s15 }
0x1355   :  { %v1866_v59 = vpop.permute.xlu0 %1865 }
0x1356   :  { %2839 = vmatmul.mubr.msk.f32.vlgmr.msra.gmra.mrb[18].mxu1 %vm33_vm0, %v1866_v59 }
0x1357   :  { %3024 = vmatpush3.bf16.msra.mxu1 %v3257_v5  ;;  %2860 = vmatprep.mubr.msk.f32.mxu1 %vm3184_vm1, %v3185_v4 }
0x1358   :  { %3025 = vmatprep.subr.bf16.mxu1 %v3183_v0 }
0x135a   :  { %v1941_v60 = vpop.permute.xlu1 %1940 }
0x135b   :  { %3027 = vmatpush3.bf16.msra.mxu1 %v3266_v7  ;;  %2850 = vmatmul.mubr.msk.f32.vlgmr.msra.gmra.mrb[20].mxu0 %vm33_vm0, %v1941_v60 }
0x135c   :  { %3034 = vmatprep.subr.bf16.mxu1 %v3183_v0  ;;  %3030 = vmatpush3.bf16.msra.mxu0 %v3292_v28 }
0x135d   :  { %3031 = vmatprep.subr.bf16.mxu0 %v3183_v0  ;;  %2871 = vmatprep.mubr.msk.f32.mxu0 %vm3184_vm1, %v3185_v4 }
0x135e   :  { %2861 = vmatmul.mubr.msk.f32.vlgmr.msra.gmra.mrb[20].mxu1 %vm33_vm0, %v1941_v60 }
0x135f   :  { %3036 = vmatpush3.bf16.msra.mxu1 %v3303_v32  ;;  %2882 = vmatprep.mubr.msk.f32.mxu1 %vm3184_vm1, %v3185_v4  ;;  %v2488_v32 = vld [vmem:[%s3686_s1 + $0x38] sm:$0xff] }
0x1360   :  { %3037 = vmatprep.subr.bf16.mxu1 %v3183_v0  ;;  %3033 = vmatpush3.bf16.msra.mxu0 %v3312_v35 }
0x1361   :  { %3040 = vmatprep.subr.bf16.mxu0 %v3183_v0 }
0x1363   :  { %3039 = vmatpush3.bf16.msra.mxu1 %v3316_v36 }
0x1429   :  { %v1935_v5 = vpop.f32.mrb[18].mxu1 }
0x142a   :  { %v2840_v7 = vpop.f32.mrb[19].mxu1 }
0x142e   :  { %v2010_v28 = vpop.f32.mrb[20].mxu0 }
0x142f   :  { %v2011_v62 = vadd.f32 %v2010_v28, %v1935_v5  ;;  %v2851_v63 = vpop.f32.mrb[21].mxu0 }
0x1430   :  { %v67_v63 = vld [vmem:[#allocation2 + $0x20] sm:$0xff] }
0x1431   :  { %v2014_v1 = vadd.f32 %v3352_v45, %v2011_v62  ;;  %v2116_v2 = vpop.f32.mrb[20].mxu1 }
0x1432   :  { %v2120_v3 = vadd.f32 %v2488_v32, %v2116_v2  ;;  %v2862_v6 = vpop.f32.mrb[21].mxu1 }
0x1433   :  { %3159 = vtanh.f32 %v2014_v1  ;;  %v2487_v36 = vmul.f32 -1.442695, %v2014_v1  ;;  %v2355_v6 = vld [vmem:[%s3691_s6] sm:$0xff] }
0x1434   :  { %3161 = vtanh.f32 %v2120_v3  ;;  %v2490_v9 = vmul.f32 -1.442695, %v2120_v3 }
0x1435   :  { %3163 = vpow2.f32 %v2487_v36 }
0x1436   :  { %3165 = vpow2.f32 %v2490_v9  ;;  %v2358_v9 = vld [vmem:[%s3691_s6 + $0x18] sm:$0xff] }
0x143d   :  { %v3160_v35 = vpop.eup %3159 }
0x143e   :  { %v3162_v8 = vpop.eup %3161  ;;  %2024 = vrot.lane.b32.xlu0 %v3160_v35, %s3186_s14  ;;  %v2356_v35 = vld [vmem:[%s3691_s6 + $0x8] sm:$0xff] }
0x143f   :  { %2130 = vrot.lane.b32.xlu1 %v3162_v8, %s3186_s14  ;;  %v3164_v10 = vpop.eup %3163  ;;  %v2357_v8 = vld [vmem:[%s3691_s6 + $0x10] sm:$0xff]  ;;  %v3041_v36 = vpack.c.bf16 %v2356_v35, %v2355_v6 }
0x1440   :  { %v3166_v12 = vpop.eup %3165  ;;  %v2018_v13 = vadd.f32 1.0, %v3164_v10  ;;  %v3044_v10 = vpack.c.bf16 %v2358_v9, %v2357_v8 }
0x1441   :  { %v2124_v14 = vadd.f32 1.0, %v3166_v12 }
0x1442   :  { %3167 = vrcp.f32 %v2018_v13 }
0x1443   :  { %3169 = vrcp.f32 %v2124_v14 }
0x144c   :  { %v3168_v15 = vpop.eup %3167 }
0x144d   :  { %v3170_v17 = vpop.eup %3169  ;;  %v2022_v22 = vmul.f32 %v3168_v15, %v3580_v49  ;;  %v3188_v49 = vmov 0  }
0x144e   :  { %v2128_v23 = vmul.f32 %v3170_v17, %v3584_v52  ;;  %3054 = vset.pattern.permute.xlu1 %v3188_v49  ;;  %3053 = vset.pattern.permute.xlu0 %v3188_v49  ;;  %v637_v51 = vsel %vm636_vm2, 1, %v3188_v49  ;;  %v918_v52 = vsel %vm917_vm3, 1, %v3188_v49  ;;  %v2042_v54 = vsel %vm2041_vm5, 1, %v3188_v49 }
0x144f   :  { %v1199_v55 = vsel %vm1198_vm7, 1, %v3188_v49  ;;  %v1761_v57 = vsel %vm1760_vm8, 1, %v3188_v49  ;;  %v2323_v58 = vsel %vm2322_vm9, 1, %v3188_v49 }
0x14b0   :  { %v2025_v16 = vpop.permute.xlu0 %2024 }
0x14b1   :  { %v2131_v18 = vpop.permute.xlu1 %2130  ;;  %v2027_v19 = vmul.f32 %v3168_v15, %v2025_v16 }
0x14b2   :  { %v2133_v21 = vmul.f32 %v3170_v17, %v2131_v18 }
0x14b3   :  { %2029 = vrot.lane.b32.xlu0 %v2027_v19, %s3187_s15 }
0x14b4   :  { %2135 = vrot.lane.b32.xlu1 %v2133_v21, %s3187_s15 }
0x1525   :  { %v2030_v24 = vpop.permute.xlu0 %2029 }
0x1526   :  { %v2136_v26 = vpop.permute.xlu1 %2135  ;;  %v3624_v27 = vadd.f32 %v2030_v24, %v2022_v22 }
0x1527   :  { %v3626_v29 = vadd.f32 %v2136_v26, %v2128_v23 }
0x1528   :  { %3171 = vtanh.f32 %v3624_v27 }
0x1529   :  { %3173 = vtanh.f32 %v3626_v29 }
0x1532   :  { %v3172_v30 = vpop.eup %3171 }
0x1533   :  { %v3174_v31 = vpop.eup %3173  ;;  %2035 = vrot.lane.b32.xlu0 %v3172_v30, %s3186_s14 }
0x1534   :  { %2141 = vrot.lane.b32.xlu1 %v3174_v31, %s3186_s14 }
0x15a5   :  { %v2036_v33 = vpop.permute.xlu0 %2035 }
0x15a6   :  { %v2142_v34 = vpop.permute.xlu1 %2141  ;;  %v3632_v37 = vmul.f32 %v3168_v15, %v2036_v33 }
0x15a7   :  { %v2144_v38 = vmul.f32 %v3170_v17, %v2142_v34  ;;  %v2494_v34 = vld [vmem:[%s3692_s7] ss:$0 sm:$0xff] }
0x15a8   :  { %2146 = vrot.lane.b32.xlu0 %v3632_v37, %s3187_s15 }
0x15a9   :  { %2221 = vrot.lane.b32.xlu1 %v2144_v38, %s3187_s15 }
0x161a   :  { %v2147_v39 = vpop.permute.xlu0 %2146 }
0x161b   :  { %v2222_v40 = vpop.permute.xlu1 %2221  ;;  %2872 = vmatmul.mubr.msk.f32.vlgmr.msra.gmra.mrb[22].mxu0 %vm33_vm0, %v2147_v39 }
0x161c   :  { %2330 = vst.msk [vmem:[#allocation2] sm:$0xff] %vm33_vm0, %v2222_v40  ;;  %2883 = vmatmul.mubr.msk.f32.vlgmr.msra.gmra.mrb[22].mxu1 %vm33_vm0, %v2222_v40  ;;  %2893 = vmatprep.mubr.msk.f32.mxu0 %vm3184_vm1, %v3185_v4  ;;  %v1480_v4 = vsel %vm1479_vm4, 1, %v3188_v49 }
0x161d   :  { %3042 = vmatpush3.bf16.msra.mxu0 %v3041_v36 }
0x161e   :  { %3043 = vmatprep.subr.bf16.mxu0 %v3183_v0 }
0x1621   :  { %3045 = vmatpush3.bf16.msra.mxu0 %v3044_v10 }
0x16ee   :  { %v2216_v41 = vpop.f32.mrb[22].mxu0 }
0x16ef   :  { %v2291_v42 = vpop.f32.mrb[22].mxu1  ;;  %v2873_v43 = vpop.f32.mrb[23].mxu0 }
0x16f0   :  { %v2292_v44 = vadd.f32 %v2291_v42, %v2216_v41  ;;  %v2884_v47 = vpop.f32.mrb[23].mxu1 }
0x16f2   :  { %v2295_v48 = vadd.f32 %v3352_v45, %v2292_v44  ;;  %v352_v45 = vsel %vm351_vm6, 1, %v3188_v49 }
0x16f4   :  { %3175 = vtanh.f32 %v2295_v48  ;;  %v2493_v59 = vmul.f32 -1.442695, %v2295_v48 }
0x16f6   :  { %3177 = vpow2.f32 %v2493_v59 }
0x16fe   :  { %v3176_v53 = vpop.eup %3175 }
0x16ff   :  { %2305 = vrot.lane.b32.xlu0 %v3176_v53, %s3186_s14 }
0x1700   :  { %v3178_v60 = vpop.eup %3177 }
0x1701   :  { %v2299_v5 = vadd.f32 1.0, %v3178_v60 }
0x1703   :  { %354 = vperm.xlu0 %3053, %v352_v45   ;;  %3179 = vrcp.f32 %v2299_v5 }
0x1707   :  { %1201 = vperm.xlu0 %3053, %v1199_v55  }
0x170b   :  { %1763 = vperm.xlu0 %3053, %v1761_v57  }
0x170d   :  { %v3180_v7 = vpop.eup %3179 }
0x170e   :  { %v2303_v32 = vmul.f32 %v3180_v7, %v3624_v27 }
0x170f   :  { %2325 = vperm.xlu0 %3053, %v2323_v58  }
0x1771   :  { %v2306_v28 = vpop.permute.xlu0 %2305 }
0x1772   :  { %v2308_v62 = vmul.f32 %v3180_v7, %v2306_v28 }
0x1774   :  { %2310 = vrot.lane.b32.xlu1 %v2308_v62, %s3187_s15 }
0x1778   :  { %639 = vperm.xlu1 %3054, %v637_v51  }
0x177c   :  { %920 = vperm.xlu1 %3054, %v918_v52  }
0x1780   :  { %1482 = vperm.xlu1 %3054, %v1480_v4  }
0x1782   :  { %v355_v16 = vpop.permute.xlu0 %354 }
0x1783   :  { %vm356_vm10 = vcmp.eq.s32.totalorder %v355_v16, 1 }
0x1784   :  { %2044 = vperm.xlu1 %3054, %v2042_v54  }
0x1786   :  { %v1202_v19 = vpop.permute.xlu0 %1201 }
0x1787   :  { %vm1203_vm13 = vcmp.eq.s32.totalorder %v1202_v19, 1 }
0x1788   :  { %358 = vrot.lane.b32.xlu1 %v67_v63, %s3189_s0 }
0x178a   :  { %v1764_v0 = vpop.permute.xlu0 %1763 }
0x178b   :  { %vm1765_vm15 = vcmp.eq.s32.totalorder %v1764_v0, 1 }
0x178e   :  { %v2326_v26 = vpop.permute.xlu0 %2325 }
0x178f   :  { %vm2327_vm2 = vcmp.eq.s32.totalorder %v2326_v26, 1 }
0x17e6   :  { %v2311_v1 = vpop.permute.xlu1 %2310 }
0x17e7   :  { %v2313_v2 = vadd.f32 %v2311_v1, %v2303_v32 }
0x17e9   :  { %3181 = vtanh.f32 %v2313_v2 }
0x17f3   :  { %v3182_v3 = vpop.eup %3181 }
0x17f4   :  { %2316 = vrot.lane.b32.xlu0 %v3182_v3, %s3186_s14 }
0x17f7   :  { %v640_v12 = vpop.permute.xlu1 %639 }
0x17f8   :  { %2332 = vrot.lane.b32.xlu0 %v3626_v29, %s3189_s0  ;;  %vm641_vm11 = vcmp.eq.s32.totalorder %v640_v12, 1 }
0x17fb   :  { %v921_v13 = vpop.permute.xlu1 %920 }
0x17fc   :  { %2342 = vrot.lane.b32.xlu0 %v2313_v2, %s3189_s0  ;;  %vm922_vm12 = vcmp.eq.s32.totalorder %v921_v13, 1 }
0x17ff   :  { %v1483_v14 = vpop.permute.xlu1 %1482 }
0x1800   :  { %vm1484_vm14 = vcmp.eq.s32.totalorder %v1483_v14, 1 }
0x1803   :  { %v2045_v15 = vpop.permute.xlu1 %2044 }
0x1804   :  { %vm2046_vm1 = vcmp.eq.s32.totalorder %v2045_v15, 1 }
0x1807   :  { %v359_v17 = vpop.permute.xlu1 %358 }
0x1808   :  { %v361_v18 = vsel %vm356_vm10, %v3369_v20, %v359_v17 }
0x1809   :  { %v642_v21 = vsel %vm641_vm11, %v3413_v61, %v361_v18 }
0x180a   :  { %v923_v22 = vsel %vm922_vm12, %v3457_v46, %v642_v21 }
0x180b   :  { %v1204_v23 = vsel %vm1203_vm13, %v3501_v25, %v923_v22 }
0x180c   :  { %v1485_v24 = vsel %vm1484_vm14, %v3545_v11, %v1204_v23 }
0x180d   :  { %v1766_v27 = vsel %vm1765_vm15, %v3589_v56, %v1485_v24 }
0x180e   :  { %v2047_v30 = vsel %vm2046_vm1, %v3632_v37, %v1766_v27 }
0x1866   :  { %v2317_v29 = vpop.permute.xlu0 %2316 }
0x1867   :  { %v2319_v20 = vmul.f32 %v3180_v7, %v2317_v29 }
0x1869   :  { %v2328_v61 = vsel %vm2327_vm2, %v2319_v20, %v2047_v30 }
0x186a   :  { %v2333_v31 = vpop.permute.xlu0 %2332  ;;  %v2354_v46 = vmax.f32 %v2328_v61, 0.0 }
0x186b   :  { %2335 = vst.msk [vmem:[#allocation2 + $0x10] sm:$0xff] %vm33_vm0, %v2333_v31 }
0x186c   :  { %2367 = vrot.lane.b32.xlu1 %v2354_v46, %s3187_s15 }
0x186e   :  { %v2343_v25 = vpop.permute.xlu0 %2342 }
0x186f   :  { %2345 = vst.msk [vmem:[#allocation2 + $0x18] sm:$0xff] %vm33_vm0, %v2343_v25 }
0x1870   :  { %2337 = vrot.lane.b32.xlu1 %v2319_v20, %s3187_s15 }
0x1874   :  { %2347 = vrot.lane.b32.xlu1 %v2328_v61, %s3187_s15 }
0x18de   :  { %v2368_v11 = vpop.permute.xlu1 %2367 }
0x18df   :  { %2894 = vmatmul.mubr.msk.f32.vlgmr.msra.gmra.mrb[24].mxu0 %vm33_vm0, %v2368_v11 }
0x18e2   :  { %v2338_v56 = vpop.permute.xlu1 %2337 }
0x18e3   :  { %2340 = vst.msk [vmem:[#allocation2 + $0x8] sm:$0xff] %vm33_vm0, %v2338_v56 }
0x18e6   :  { %v2348_v33 = vpop.permute.xlu1 %2347 }
0x18e7   :  { %2350 = vst.msk [vmem:[#allocation2 + $0x20] sm:$0xff] %vm33_vm0, %v2348_v33 }
0x19b2   :  { %v2437_v37 = vpop.f32.mrb[24].mxu0 }
0x19b3   :  { %v2438_v38 = vadd.f32 %v2494_v34, %v2437_v37  ;;  %v2895_v39 = vpop.f32.mrb[25].mxu0 }
0x19b5   :  { %2441 = vst [vmem:[%s3693_s8] sm:$0xff] %v2438_v38 }

</bundles_post_ra>
